<compile_context>
chip_gen: v7x
topology: tpu7x:2x2x1
jax: 0.10.0
libtpu: 0.0.40
codegen_flags: <defaults>
</compile_context>

<pallas_src>
import jax
import jax.numpy as jnp
from jax.experimental import pallas as pl
from jax.experimental.pallas import tpu as pltpu

# Model dimensions implied by the PyTorch module.
C_OUT, KH, KW = 32, 3, 3
H_IN, W_IN = 12, 62                      # 32*6*31 fc1 inputs => 12x62 spatial, 1 channel
H_P, W_P = H_IN // 2, W_IN // 2          # pooled spatial = 6 x 31
S = H_P * W_P                            # 186 pooled positions
S_PAD = 256                              # lane-aligned pooled spatial
FEAT = C_OUT * S                         # 5952
HID, N_CLS = 128, 2
TAPS = KH * KW                           # 9
TAPS_PAD = 16                            # bf16 (16,128) packed-tile aligned contraction
NPAR = 4                                 # 2x2 pool parities
CH = 8                                   # fc1 channels per grid step
NCH = C_OUT // CH                        # 4 streamed w1 chunks


# ---------------------------------------------------------------------------
# Fused kernel.  Grid = (batch_tiles [parallel], fc1 channel chunks [arbitrary]).
#   t_ref  : [4, 16, BT*256]   tap tensor block (parity, tap, b*256 + i*31 + j), bf16
#   wc_ref : [32, 16]          conv weights (tap-major, zero-padded taps), bf16
#   bc_ref : [32, 1]           conv bias, f32
#   w1_ref : [8, 256, 128]     streamed fc1 weight chunk, bf16 (rows >=186 are zero)
#   b1_ref : [1, 128]          fc1 bias, f32
#   w2_ref : [128, 2]          fc2.weight.T, f32
#   b2_ref : [1, 2]            fc2 bias, f32
#   o_ref  : [BT, 2]           logits
#   pool_sc: [32, BT, 256]     pooled activations (bf16) persisted across the kc axis
#   acc_sc : [BT, 128]         f32 fc1 accumulator
def fused_cnn_kernel(t_ref, wc_ref, bc_ref, w1_ref, b1_ref, w2_ref, b2_ref,
                     o_ref, pool_sc, acc_sc):
    bt = o_ref.shape[0]
    kc = pl.program_id(1)                # fc1 channel-chunk (reduction) axis

    # --- once per batch tile (kc == 0): conv + bias + ReLU + 2x2 maxpool ---------------
    @pl.when(kc == 0)
    def _():
        wc = wc_ref[...]                                               # [32, 16] bf16
        conv = jnp.dot(wc, t_ref[0], preferred_element_type=jnp.float32)
        for p in range(1, NPAR):         # maxpool(2,2) == max over the 4 parity planes
            conv = jnp.maximum(
                conv, jnp.dot(wc, t_ref[p], preferred_element_type=jnp.float32))
        pooled = jnp.maximum(conv + bc_ref[...], 0.0)                  # [32, bt*256] f32
        # One-time layout change (lanes (b,s) -> (sublane b, lane s)) + single bf16 cast;
        # hidden under the w1 chunk streaming of later steps.
        pool_sc[...] = pooled.reshape(C_OUT, bt, S_PAD).astype(jnp.bfloat16)
        acc_sc[...] = jnp.zeros_like(acc_sc)

    # --- every step: fc1 partial over CH channels; w1 chunk is streamed by BlockSpec ---
    c0 = pl.multiple_of(kc * CH, CH)
    xc = pool_sc[pl.ds(c0, CH)]                                        # [CH, bt, 256] bf16
    part = jnp.einsum('cbs,csh->cbh', xc, w1_ref[...],
                      preferred_element_type=jnp.float32)              # [CH, bt, 128]
    acc_sc[...] += jnp.sum(part, axis=0)

    # --- last step: fc1 bias + ReLU + fc2 ----------------------------------------------
    @pl.when(kc == NCH - 1)
    def _():
        h = jnp.maximum(acc_sc[...] + b1_ref[...], 0.0)                # [bt, 128] f32
        o_ref[...] = (jnp.dot(h, w2_ref[...], preferred_element_type=jnp.float32)
                      + b2_ref[...])


# ---------------------------------------------------------------------------
def prepare_params(params):
    """One-time (outside jit) re-layout of torch-layout params into kernel layout."""
    wc, bc, w1, b1, w2, b2 = params
    wc16 = jnp.pad(wc.reshape(C_OUT, TAPS),
                   ((0, 0), (0, TAPS_PAD - TAPS))).astype(jnp.bfloat16)          # [32, 16]
    bc_col = bc.reshape(C_OUT, 1).astype(jnp.float32)                            # [32, 1]
    # w1p[c, s, j] = fc1.weight[j, c*186 + s]; rows s >= 186 are ZERO so the padded lanes
    # of the pooled activations (which hold relu(bias)) contribute nothing.
    w1p = jnp.transpose(w1.reshape(HID, C_OUT, S), (1, 2, 0))                     # [32,186,128]
    w1p = jnp.pad(w1p, ((0, 0), (0, S_PAD - S), (0, 0))).astype(jnp.bfloat16)     # [32,256,128]
    b1_row = b1.reshape(1, HID).astype(jnp.float32)
    w2t = jnp.transpose(w2).astype(jnp.float32)                                   # [128, 2]
    b2_row = b2.reshape(1, N_CLS).astype(jnp.float32)
    return wc16, bc_col, w1p, b1_row, w2t, b2_row


def simple_cnn_forward(x, kparams):
    """x: [B, 1, 12, 62] float32 (NCHW), kparams from prepare_params().  Returns [B, 2]."""
    wc16, bc_col, w1p, b1_row, w2t, b2_row = kparams
    B = x.shape[0]
    BT = B if B <= 8 else 8                      # batch tile (leading "parallel" grid axis)
    n_bt = pl.cdiv(B, BT)
    Bp = n_bt * BT
    if Bp != B:
        x = jnp.pad(x, ((0, Bp - B), (0, 0), (0, 0), (0, 0)))

    # Tap-tensor glue: T[p, t, b*256 + (i*31+j)] = xpad[b, 2i+hp+dh, 2j+wp+dw]
    # (p = hp*2+wp pool parity, t = dh*3+dw stencil tap).  Pure strided rearrangement of
    # ~36 KB/image in bf16; fuses under jit.
    # TODO(synk): if xprof shows this glue not fusing, pass xpad [B,14,64] into the kernel.
    xpad = jnp.pad(x[:, 0], ((0, 0), (1, 1), (1, 1)))                  # [Bp, 14, 64]
    par_rows = []
    for p in range(NPAR):
        hp, wp = divmod(p, 2)
        tap_rows = []
        for t in range(TAPS):
            dh, dw = divmod(t, 3)
            v = xpad[:, hp + dh:hp + dh + 2 * H_P:2,
                        wp + dw:wp + dw + 2 * W_P:2].reshape(Bp, S)    # [Bp, 186]
            v = jnp.pad(v, ((0, 0), (0, S_PAD - S)))                   # [Bp, 256]
            tap_rows.append(v.reshape(Bp * S_PAD))
        tp = jnp.stack(tap_rows, axis=0)                               # [9, Bp*256]
        par_rows.append(jnp.pad(tp, ((0, TAPS_PAD - TAPS), (0, 0))))   # [16, Bp*256]
    T = jnp.stack(par_rows, axis=0).astype(jnp.bfloat16)               # [4, 16, Bp*256]

    lanes = BT * S_PAD
    out = pl.pallas_call(
        fused_cnn_kernel,
        out_shape=jax.ShapeDtypeStruct((Bp, N_CLS), jnp.float32),
        grid=(n_bt, NCH),
        in_specs=[
            pl.BlockSpec((NPAR, TAPS_PAD, lanes), lambda bt, kc: (0, 0, bt)),
            pl.BlockSpec((C_OUT, TAPS_PAD), lambda bt, kc: (0, 0)),
            pl.BlockSpec((C_OUT, 1), lambda bt, kc: (0, 0)),
            pl.BlockSpec((CH, S_PAD, HID), lambda bt, kc: (kc, 0, 0)),   # streamed w1 chunk
            pl.BlockSpec((1, HID), lambda bt, kc: (0, 0)),
            pl.BlockSpec((HID, N_CLS), lambda bt, kc: (0, 0)),
            pl.BlockSpec((1, N_CLS), lambda bt, kc: (0, 0)),
        ],
        out_specs=pl.BlockSpec((BT, N_CLS), lambda bt, kc: (bt, 0)),
        scratch_shapes=[
            pltpu.VMEM((C_OUT, BT, S_PAD), jnp.bfloat16),   # pooled activations
            pltpu.VMEM((BT, HID), jnp.float32),             # fc1 accumulator
        ],
        compiler_params=pltpu.CompilerParams(
            dimension_semantics=("parallel", "arbitrary"),
            vmem_limit_bytes=32 * 1024 * 1024),
    )(T, wc16, bc_col, w1p, b1_row, w2t, b2_row)
    return out[:B]


# Pure-JAX reference (outside Pallas) mirroring the PyTorch forward exactly.
def reference_forward(x, params):
    wc, bc, w1, b1, w2, b2 = params
    y = jax.lax.conv_general_dilated(
        x, wc, window_strides=(1, 1), padding=((1, 1), (1, 1)),
        dimension_numbers=("NCHW", "OIHW", "NCHW"))
    y = jnp.maximum(y + bc[None, :, None, None], 0.0)
    B, C, H, W = y.shape
    y = y.reshape(B, C, H // 2, 2, W // 2, 2).max(axis=(3, 5))   # MaxPool2d(2, 2)
    f = y.reshape(B, -1)                                         # torch.flatten(x, 1)
    h = jnp.maximum(f @ w1.T + b1, 0.0)
    return h @ w2.T + b2


if __name__ == "__main__":
    key = jax.random.PRNGKey(0)
    kx, kwc, kbc, kw1, kb1, kw2, kb2 = jax.random.split(key, 7)

    # Deterministic synthetic input + parameters (torch-layout shapes).
    x = jax.random.normal(kx, (2, 1, H_IN, W_IN), jnp.float32)
    wc = 0.10 * jax.random.normal(kwc, (C_OUT, 1, KH, KW), jnp.float32)   # conv1.weight
    bc = 0.10 * jax.random.normal(kbc, (C_OUT,), jnp.float32)             # conv1.bias
    w1 = 0.02 * jax.random.normal(kw1, (HID, FEAT), jnp.float32)          # fc1.weight
    b1 = 0.10 * jax.random.normal(kb1, (HID,), jnp.float32)               # fc1.bias
    w2 = 0.10 * jax.random.normal(kw2, (N_CLS, HID), jnp.float32)         # fc2.weight
    b2 = 0.10 * jax.random.normal(kb2, (N_CLS,), jnp.float32)             # fc2.bias
    params = (wc, bc, w1, b1, w2, b2)

    # One-time parameter re-layout (outside jit).
    kparams = prepare_params(params)

    fwd = jax.jit(simple_cnn_forward)
    out = jax.block_until_ready(fwd(x, kparams))
    ref = jax.block_until_ready(reference_forward(x, params))

    assert out.shape == (2, N_CLS), out.shape
    if not bool(jnp.allclose(out, ref, atol=5e-2, rtol=5e-2)):
        diff = float(jnp.max(jnp.abs(out - ref)))
        raise AssertionError(f"Pallas output mismatch vs reference, max|diff|={diff}")
    print("KERNEL_OK")
</pallas_src>

<mosaic_0001>
module attributes {stable_mosaic.version = 11 : i64} {
  func.func @fused_cnn_kernel(%arg0: i32, %arg1: i32, %arg2: memref<4x16x512xbf16, #tpu.memory_space<vmem>>, %arg3: memref<32x16xbf16, #tpu.memory_space<vmem>>, %arg4: memref<32x1xf32, #tpu.memory_space<vmem>>, %arg5: memref<8x256x128xbf16, #tpu.memory_space<vmem>>, %arg6: memref<1x128xf32, #tpu.memory_space<vmem>>, %arg7: memref<128x2xf32, #tpu.memory_space<vmem>>, %arg8: memref<1x2xf32, #tpu.memory_space<vmem>>, %arg9: memref<2x2xf32, #tpu.memory_space<vmem>>, %arg10: memref<32x2x256xbf16, #tpu.memory_space<vmem>>, %arg11: memref<2x128xf32, #tpu.memory_space<vmem>>) attributes {dimension_semantics = [#tpu.dimension_semantics<parallel>, #tpu.dimension_semantics<arbitrary>], iteration_bounds = array<i64: 1, 4>, scalar_prefetch = 0 : i64, scratch_operands = 2 : i64, tpu.core_type = #tpu.core_type<tc>, window_params = [{transform_indices = @transform_0, window_bounds = array<i64: 4, 16, 512>}, {pipeline_mode = #tpu.pipeline_mode<synchronous>, transform_indices = @transform_1, window_bounds = array<i64: 32, 16>}, {pipeline_mode = #tpu.pipeline_mode<synchronous>, transform_indices = @transform_2, window_bounds = array<i64: 32, 1>}, {transform_indices = @transform_3, window_bounds = array<i64: 8, 256, 128>}, {pipeline_mode = #tpu.pipeline_mode<synchronous>, transform_indices = @transform_4, window_bounds = array<i64: 1, 128>}, {pipeline_mode = #tpu.pipeline_mode<synchronous>, transform_indices = @transform_5, window_bounds = array<i64: 128, 2>}, {pipeline_mode = #tpu.pipeline_mode<synchronous>, transform_indices = @transform_6, window_bounds = array<i64: 1, 2>}, {transform_indices = @transform_7, window_bounds = array<i64: 2, 2>}]} {
    %c0_i32 = arith.constant 0 : i32
    %0 = arith.cmpi eq, %arg1, %c0_i32 : i32
    %1 = arith.extui %0 : i1 to i32
    %c0_i32_0 = arith.constant 0 : i32
    %2 = arith.cmpi ne, %1, %c0_i32_0 : i32
    scf.if %2 {
      %c0_11 = arith.constant 0 : index
      %c0_12 = arith.constant 0 : index
      %16 = vector.load %arg3[%c0_11, %c0_12] : memref<32x16xbf16, #tpu.memory_space<vmem>>, vector<32x16xbf16>
      %c0_13 = arith.constant 0 : index
      %c0_14 = arith.constant 0 : index
      %c0_15 = arith.constant 0 : index
      %17 = vector.load %arg2[%c0_13, %c0_14, %c0_15] : memref<4x16x512xbf16, #tpu.memory_space<vmem>>, vector<1x16x512xbf16>
      %18 = vector.shape_cast %17 : vector<1x16x512xbf16> to vector<16x512xbf16>
      %cst_16 = arith.constant dense<0.000000e+00> : vector<32x512xf32>
      %19 = tpu.matmul %16, %18, %cst_16 {dimension_numbers = #tpu.dot_dimension_numbers<[1], [0], [0], [1], [0, 0, 1, 1], [], []>} : vector<32x16xbf16>, vector<16x512xbf16>, vector<32x512xf32> -> vector<32x512xf32>
      %c1 = arith.constant 1 : index
      %c0_17 = arith.constant 0 : index
      %c0_18 = arith.constant 0 : index
      %20 = vector.load %arg2[%c1, %c0_17, %c0_18] : memref<4x16x512xbf16, #tpu.memory_space<vmem>>, vector<1x16x512xbf16>
      %21 = vector.shape_cast %20 : vector<1x16x512xbf16> to vector<16x512xbf16>
      %cst_19 = arith.constant dense<0.000000e+00> : vector<32x512xf32>
      %22 = tpu.matmul %16, %21, %cst_19 {dimension_numbers = #tpu.dot_dimension_numbers<[1], [0], [0], [1], [0, 0, 1, 1], [], []>} : vector<32x16xbf16>, vector<16x512xbf16>, vector<32x512xf32> -> vector<32x512xf32>
      %23 = arith.maximumf %19, %22 : vector<32x512xf32>
      %c2 = arith.constant 2 : index
      %c0_20 = arith.constant 0 : index
      %c0_21 = arith.constant 0 : index
      %24 = vector.load %arg2[%c2, %c0_20, %c0_21] : memref<4x16x512xbf16, #tpu.memory_space<vmem>>, vector<1x16x512xbf16>
      %25 = vector.shape_cast %24 : vector<1x16x512xbf16> to vector<16x512xbf16>
      %cst_22 = arith.constant dense<0.000000e+00> : vector<32x512xf32>
      %26 = tpu.matmul %16, %25, %cst_22 {dimension_numbers = #tpu.dot_dimension_numbers<[1], [0], [0], [1], [0, 0, 1, 1], [], []>} : vector<32x16xbf16>, vector<16x512xbf16>, vector<32x512xf32> -> vector<32x512xf32>
      %27 = arith.maximumf %23, %26 : vector<32x512xf32>
      %c3 = arith.constant 3 : index
      %c0_23 = arith.constant 0 : index
      %c0_24 = arith.constant 0 : index
      %28 = vector.load %arg2[%c3, %c0_23, %c0_24] : memref<4x16x512xbf16, #tpu.memory_space<vmem>>, vector<1x16x512xbf16>
      %29 = vector.shape_cast %28 : vector<1x16x512xbf16> to vector<16x512xbf16>
      %cst_25 = arith.constant dense<0.000000e+00> : vector<32x512xf32>
      %30 = tpu.matmul %16, %29, %cst_25 {dimension_numbers = #tpu.dot_dimension_numbers<[1], [0], [0], [1], [0, 0, 1, 1], [], []>} : vector<32x16xbf16>, vector<16x512xbf16>, vector<32x512xf32> -> vector<32x512xf32>
      %31 = arith.maximumf %27, %30 : vector<32x512xf32>
      %c0_26 = arith.constant 0 : index
      %c0_27 = arith.constant 0 : index
      %32 = vector.load %arg4[%c0_26, %c0_27] : memref<32x1xf32, #tpu.memory_space<vmem>>, vector<32x1xf32>
      %33 = vector.broadcast %32 : vector<32x1xf32> to vector<32x512xf32>
      %34 = arith.addf %31, %33 : vector<32x512xf32>
      %cst_28 = arith.constant 0.000000e+00 : f32
      %35 = vector.broadcast %cst_28 : f32 to vector<32x512xf32>
      %36 = arith.maximumf %34, %35 : vector<32x512xf32>
      %37 = vector.shape_cast %36 : vector<32x512xf32> to vector<32x2x256xf32>
      %38 = arith.truncf %37 : vector<32x2x256xf32> to vector<32x2x256xbf16>
      %c0_29 = arith.constant 0 : index
      %c0_30 = arith.constant 0 : index
      %c0_31 = arith.constant 0 : index
      %39 = vector.load %arg10[%c0_29, %c0_30, %c0_31] : memref<32x2x256xbf16, #tpu.memory_space<vmem>>, vector<32x2x256xbf16>
      tpu.vector_store %arg10[%c0_29, %c0_30, %c0_31], %38 {strides = array<i32>} : memref<32x2x256xbf16, #tpu.memory_space<vmem>>, vector<32x2x256xbf16>,
      %cst_32 = arith.constant 0.000000e+00 : f32
      %40 = vector.broadcast %cst_32 : f32 to vector<2x128xf32>
      %c0_33 = arith.constant 0 : index
      %c0_34 = arith.constant 0 : index
      %41 = vector.load %arg11[%c0_33, %c0_34] : memref<2x128xf32, #tpu.memory_space<vmem>>, vector<2x128xf32>
      tpu.vector_store %arg11[%c0_33, %c0_34], %40 {strides = array<i32>} : memref<2x128xf32, #tpu.memory_space<vmem>>, vector<2x128xf32>,
    } else {
    }
    %c8_i32 = arith.constant 8 : i32
    %3 = arith.muli %arg1, %c8_i32 : i32
    %4 = tpu.assume_multiple %3, 8 : i32
    %5 = arith.index_cast %4 : i32 to index
    %c0 = arith.constant 0 : index
    %c0_1 = arith.constant 0 : index
    %6 = vector.load %arg10[%5, %c0, %c0_1] : memref<32x2x256xbf16, #tpu.memory_space<vmem>>, vector<8x2x256xbf16>
    %c0_2 = arith.constant 0 : index
    %c0_3 = arith.constant 0 : index
    %c0_4 = arith.constant 0 : index
    %7 = vector.load %arg5[%c0_2, %c0_3, %c0_4] : memref<8x256x128xbf16, #tpu.memory_space<vmem>>, vector<8x256x128xbf16>
    "tpu.trace_start"() <{level = 10 : i32, message = "cbs,csh->cbh"}> : () -> ()
    %cst = arith.constant dense<0.000000e+00> : vector<8x2x128xf32>
    %8 = tpu.matmul %6, %7, %cst {dimension_numbers = #tpu.dot_dimension_numbers<[2], [1], [1], [2], [0, 0, 0, 1, 1, 2], [0], [0]>} : vector<8x2x256xbf16>, vector<8x256x128xbf16>, vector<8x2x128xf32> -> vector<8x2x128xf32>
    "tpu.trace_stop"() : () -> ()
    %c0_5 = arith.constant 0 : index
    %c0_6 = arith.constant 0 : index
    %9 = vector.load %arg11[%c0_5, %c0_6] : memref<2x128xf32, #tpu.memory_space<vmem>>, vector<2x128xf32>
    %cst_7 = arith.constant dense<0.000000e+00> : vector<2x128xf32>
    %10 = vector.multi_reduction <add>, %8, %cst_7 [0] : vector<8x2x128xf32> to vector<2x128xf32>
    %11 = arith.addf %9, %10 : vector<2x128xf32>
    %c0_8 = arith.constant 0 : index
    %c0_9 = arith.constant 0 : index
    %12 = vector.load %arg11[%c0_8, %c0_9] : memref<2x128xf32, #tpu.memory_space<vmem>>, vector<2x128xf32>
    tpu.vector_store %arg11[%c0_8, %c0_9], %11 {strides = array<i32>} : memref<2x128xf32, #tpu.memory_space<vmem>>, vector<2x128xf32>,
    %c3_i32 = arith.constant 3 : i32
    %13 = arith.cmpi eq, %arg1, %c3_i32 : i32
    %14 = arith.extui %13 : i1 to i32
    %c0_i32_10 = arith.constant 0 : i32
    %15 = arith.cmpi ne, %14, %c0_i32_10 : i32
    scf.if %15 {
      %c0_11 = arith.constant 0 : index
      %c0_12 = arith.constant 0 : index
      %16 = vector.load %arg11[%c0_11, %c0_12] : memref<2x128xf32, #tpu.memory_space<vmem>>, vector<2x128xf32>
      %c0_13 = arith.constant 0 : index
      %c0_14 = arith.constant 0 : index
      %17 = vector.load %arg6[%c0_13, %c0_14] : memref<1x128xf32, #tpu.memory_space<vmem>>, vector<1x128xf32>
      %18 = vector.broadcast %17 : vector<1x128xf32> to vector<2x128xf32>
      %19 = arith.addf %16, %18 : vector<2x128xf32>
      %cst_15 = arith.constant 0.000000e+00 : f32
      %20 = vector.broadcast %cst_15 : f32 to vector<2x128xf32>
      %21 = arith.maximumf %19, %20 : vector<2x128xf32>
      %c0_16 = arith.constant 0 : index
      %c0_17 = arith.constant 0 : index
      %22 = vector.load %arg7[%c0_16, %c0_17] : memref<128x2xf32, #tpu.memory_space<vmem>>, vector<128x2xf32>
      %cst_18 = arith.constant dense<0.000000e+00> : vector<2x2xf32>
      %23 = tpu.matmul %21, %22, %cst_18 {dimension_numbers = #tpu.dot_dimension_numbers<[1], [0], [0], [1], [0, 0, 1, 1], [], []>} : vector<2x128xf32>, vector<128x2xf32>, vector<2x2xf32> -> vector<2x2xf32>
      %c0_19 = arith.constant 0 : index
      %c0_20 = arith.constant 0 : index
      %24 = vector.load %arg8[%c0_19, %c0_20] : memref<1x2xf32, #tpu.memory_space<vmem>>, vector<1x2xf32>
      %25 = vector.broadcast %24 : vector<1x2xf32> to vector<2x2xf32>
      %26 = arith.addf %23, %25 : vector<2x2xf32>
      %c0_21 = arith.constant 0 : index
      %c0_22 = arith.constant 0 : index
      %27 = vector.load %arg9[%c0_21, %c0_22] : memref<2x2xf32, #tpu.memory_space<vmem>>, vector<2x2xf32>
      tpu.vector_store %arg9[%c0_21, %c0_22], %26 {strides = array<i32>} : memref<2x2xf32, #tpu.memory_space<vmem>>, vector<2x2xf32>,
    } else {
    }
    return
  }
  func.func @transform_0(%arg0: i32, %arg1: i32) -> (i32, i32, i32) {
    %c0_i32 = arith.constant 0 : i32
    %c0_i32_0 = arith.constant 0 : i32
    %c0_i32_1 = arith.constant 0 : i32
    return %c0_i32, %c0_i32_0, %arg0 : i32, i32, i32
  }
  func.func @transform_1(%arg0: i32, %arg1: i32) -> (i32, i32) {
    %c0_i32 = arith.constant 0 : i32
    %c0_i32_0 = arith.constant 0 : i32
    %c0_i32_1 = arith.constant 0 : i32
    return %c0_i32, %c0_i32_0 : i32, i32
  }
  func.func @transform_2(%arg0: i32, %arg1: i32) -> (i32, i32) {
    %c0_i32 = arith.constant 0 : i32
    %c0_i32_0 = arith.constant 0 : i32
    %c0_i32_1 = arith.constant 0 : i32
    return %c0_i32, %c0_i32_0 : i32, i32
  }
  func.func @transform_3(%arg0: i32, %arg1: i32) -> (i32, i32, i32) {
    %c0_i32 = arith.constant 0 : i32
    %c0_i32_0 = arith.constant 0 : i32
    %c0_i32_1 = arith.constant 0 : i32
    return %arg1, %c0_i32, %c0_i32_0 : i32, i32, i32
  }
  func.func @transform_4(%arg0: i32, %arg1: i32) -> (i32, i32) {
    %c0_i32 = arith.constant 0 : i32
    %c0_i32_0 = arith.constant 0 : i32
    %c0_i32_1 = arith.constant 0 : i32
    return %c0_i32, %c0_i32_0 : i32, i32
  }
  func.func @transform_5(%arg0: i32, %arg1: i32) -> (i32, i32) {
    %c0_i32 = arith.constant 0 : i32
    %c0_i32_0 = arith.constant 0 : i32
    %c0_i32_1 = arith.constant 0 : i32
    return %c0_i32, %c0_i32_0 : i32, i32
  }
  func.func @transform_6(%arg0: i32, %arg1: i32) -> (i32, i32) {
    %c0_i32 = arith.constant 0 : i32
    %c0_i32_0 = arith.constant 0 : i32
    %c0_i32_1 = arith.constant 0 : i32
    return %c0_i32, %c0_i32_0 : i32, i32
  }
  func.func @transform_7(%arg0: i32, %arg1: i32) -> (i32, i32) {
    %c0_i32 = arith.constant 0 : i32
    %c0_i32_0 = arith.constant 0 : i32
    return %arg0, %c0_i32 : i32, i32
  }
}

</mosaic_0001>

<bundles_post_ra>
// kernel: simple_cnn_forward.1
= control target key start
LH: loop header
LB: loop body
LE: loop exit
PB: predicated region body
PF: predicated region fallthrough
CT: control target
= control target key end

     0   :  { %12 = vsyncpa [#allocation5], 0  ;;  %s5769_s0 = inlined_call_operand.vmem [shape: bf16[4,16,512], index: 0, kind: input, shape index: {}]   ;;  %s5770_s1 = inlined_call_operand.vmem [shape: bf16[32,16], index: 1, kind: input, shape index: {}]   ;;  %s5771_s2 = inlined_call_operand.vmem [shape: f32[32,1], index: 2, kind: input, shape index: {}]   ;;  %s5772_s3 = inlined_call_operand.hbm [shape: bf16[32,256,128], index: 3, kind: input, shape index: {}]   ;;  %s5773_s4 = inlined_call_operand.hbm [shape: f32[1,128], index: 4, kind: input, shape index: {}]   ;;  %s5774_s5 = inlined_call_operand.vmem [shape: f32[128,2], index: 5, kind: input, shape index: {}]   ;;  %s5775_s6 = inlined_call_operand.hbm [shape: f32[1,2], index: 6, kind: input, shape index: {}]   ;;  %s5776_s7 = inlined_call_operand.hbm [shape: f32[2,2], index: 7, kind: output, shape index: {}]  }
   0x1   :  { %14 = vsyncpa [#allocation5 + $0x1], 0 }
   0x2   :  { %15 = vsyncpa [#allocation8], 0 }
   0x3   :  { %16 = vsyncpa [#allocation6], 0  ;;  %s4996_s24 = smov 0   ;;  %s4998_s25 = smov 0  }
   0x4   :  { %s5000_s26 = smov 0   ;;  %s5002_s27 = smov 0  }
   0x5   :  { %s5004_s28 = smov 0   ;;  %s5006_s29 = smov 0  }
   0x6 LB: > { %s5782_s30 = sadd.s32 4294967295, %s4939_s29   ;;  %s109_s8 = sadd.s32 1, %s4927_s26  ;;  %s4939_s29 = sphi %s5006_s29, %s22_s29   ;;  %s4935_s28 = sphi %s5004_s28, %s5798_s28   ;;  %s4931_s27 = sphi %s5002_s27, %s5797_s27   ;;  %s4927_s26 = sphi %s5000_s26, %s5796_s26   ;;  %s4923_s25 = sphi %s4998_s25, %s5795_s25   ;;  %s4919_s24 = sphi %s4996_s24, %s5794_s24  }
   0x7   : > { %p116_p0 = scmp.ne.s32.totalorder %s4927_s26, %s4923_s25  ;;  %p117_p1 = scmp.eq.s32.totalorder %s4939_s29, 0 }
   0x8   : > { %p122_p2 = scmp.ne.s32.totalorder %s4923_s25, %s4919_s24  ;;  %p5032_p3 = scmp.eq.s32.totalorder %s5782_s30, 0 }
   0x9   : > { %p118_p4 = por %p117_p1, %p116_p0  ;;  %p3995_p5 = scmp.ge.s32.totalorder %s4939_s29, 1 }
   0xa   : > { %s5783_s9 = scalar_select %p5032_p3, 1, 0 }
   0xb   : > { %p5039_p6 = por %p5032_p3, %p122_p2  ;;  %p222_p7 = scmp.lt.s32.totalorder %s4939_s29, 5 }
   0xc   : > { %s4941_s12 = smov [#allocation7]   ;;  %p4546_p10 = scmp.lt.s32.totalorder %s4939_s29, 4 }
   0xd   : > { %s5784_s10 = scalar_select %p5039_p6, 1, 0 }
   0xe   : > { %p5044_p8 = pnand %p3995_p5, %p222_p7  ;;  %s250_s13 = sshll.u32 %s4941_s12, 4  ;;  %s251_s13 = int_to_ptr.vmem [resolvable:$true] %s250_s13 }
   0xf   : > { %p5057_p12 = pnand %p4546_p10, %p118_p4  ;;  %s4942_s16 = smov [#allocation9]  }
  0x10   : > { %s5785_s11 = scalar_select %p5044_p8, 1, 0 }
  0x11   : > { %p4533_p9 = pneg %p5044_p8  ;;  %s264_s17 = sshll.u32 %s4942_s16, 4  ;;  %s265_s17 = int_to_ptr.vmem [resolvable:$true] %s264_s17 }
  0x12   : > { %s5787_s15 = scalar_select %p5057_p12, 1, 0 }
  0x13   : > { %p5053_p11 = pnand %p4533_p9, %p5032_p3  ;;  %s4769_s20 = scalar_lea.hbm %s5773_s4, 16 }
  0x14   : > { %p4770_p13 = scmp.ne.s32.totalorder %s5773_s4, %s4769_s20  ;;  %p4776_p4 = scmp.lt.u32.totalorder %s4769_s20, %s5773_s4 }
  0x15   : > { %p4771_p0 = pneg %p5053_p11 }
  0x17   : > { %p4772_p1 = pnand %p4771_p0, %p4770_p13 }
  0x19   : > { %p4773_p2 = pneg %p4772_p1 }
  0x1b   : > { %p4778_p5 = pnand %p4776_p4, %p4773_p2 }
  0x1d   : > { %4781 = shalt.err (!%p4778_p5)
}
  0x1e   : > { %s4782_s12 = scalar_lea.vmem %s251_s13, 16  ;;  %s4789_s16 = scalar_lea.vmem %s251_s13, 32 }
  0x1f   : > { %p4783_p7 = scmp.ne.s32.totalorder %s251_s13, %s4782_s12  ;;  %p4790_p3 = scmp.lt.s32.totalorder %s251_s13, %s251_s13 }
  0x20   : > { %p4791_p6 = scmp.lt.s32.totalorder %s4789_s16, %s4782_s12 }
  0x21   : > { %p4785_p9 = pnand %p4783_p7, %p4771_p0 }
  0x22   : > { %p4792_p8 = por %p4791_p6, %p4790_p3 }
  0x23   : > { %p4786_p10 = pneg %p4785_p9 }
  0x25   : > { %p4793_p12 = pnand %p4792_p8, %p4786_p10 }
  0x27   : > { %4796 = shalt.err (!%p4793_p12)
}
  0x28   : > { %4536 = dma.hbm_to_vmem [thread:$0]  (!%p5053_p11), %s5773_s4, 16, %s251_s13, [#allocation8]  }
  0x29   : > { %s31_s20 = sadd.s32 1, %s4935_s28  ;;  %s4797_s23 = scalar_lea.hbm %s5775_s6, 16 }
  0x2a   : > { %p4798_p3 = scmp.ne.s32.totalorder %s5775_s6, %s4797_s23  ;;  %p4804_p12 = scmp.lt.u32.totalorder %s4797_s23, %s5775_s6 }
  0x2c   : > { %p4800_p6 = pnand %p4798_p3, %p4771_p0 }
  0x2e   : > { %p4801_p8 = pneg %p4800_p6 }
  0x30   : > { %p4806_p13 = pnand %p4804_p12, %p4801_p8 }
  0x32   : > { %4809 = shalt.err (!%p4806_p13)
}
  0x33   : > { %s4810_s13 = scalar_lea.vmem %s265_s17, 16  ;;  %s4817_s18 = scalar_lea.vmem %s265_s17, 32 }
  0x34   : > { %p4811_p1 = scmp.ne.s32.totalorder %s265_s17, %s4810_s13  ;;  %p4818_p5 = scmp.lt.s32.totalorder %s265_s17, %s265_s17 }
  0x35   : > { %p4819_p7 = scmp.lt.s32.totalorder %s4817_s18, %s4810_s13 }
  0x36   : > { %p4813_p2 = pnand %p4811_p1, %p4771_p0 }
  0x37   : > { %p4820_p9 = por %p4819_p7, %p4818_p5 }
  0x38   : > { %p4814_p4 = pneg %p4813_p2 }
  0x3a   : > { %p4821_p10 = pnand %p4820_p9, %p4814_p4 }
  0x3c   : > { %4824 = shalt.err (!%p4821_p10)
}
  0x3d   : > { %4539 = dma.hbm_to_vmem [thread:$0]  (!%p5053_p11), %s5775_s6, 16, %s265_s17, [#allocation8]  }
  0x3e   : > { %p32_p0 = scmp.ge.s32.totalorder %s31_s20, 4  ;;  %s275_s21 = sand.u32 1, %s4927_s26  }
  0x3f   : > { %s4000_s22 = sshll.u32 %s275_s21, 10  ;;  %s4265_s23 = sshll.u32 %s4935_s28, 14 }
  0x40   : > { %s5800_s20 = smov (%p32_p0, %s31_s20), 0  ;;  %s5113_s16 = scalar_lea.hbm %s5772_s3, %s4265_s23 }
  0x41   : > { %s106_s24 = ssub.s32 %s4935_s28, %s5800_s20  ;;  %s279_s17 = scalar_lea.vmem [#allocation4], %s4000_s22 }
  0x42   : > { %p107_p11 = scmp.eq.s32.totalorder %s106_s24, 0  ;;  %s287_s13 = sshll.u32 %s279_s17, 4  ;;  %s5115_s13 = int_to_ptr.vmem [resolvable:$true] %s287_s13 }
  0x43   : > { %s5122_s30 = scalar_lea.sflag [#allocation5], %s275_s21  ;;  %s4825_s19 = scalar_lea.hbm %s5113_s16, 16384 }
  0x44   : > { %s5120_s18 = scalar_select %p107_p11, %s4927_s26, %s109_s8  }
  0x45   : > { %p4826_p3 = scmp.ne.s32.totalorder %s5113_s16, %s4825_s19  ;;  %p5788_p6 = scmp.ne.s32.totalorder %s5787_s15, 0 }
  0x46   : > { %s4830_s22 = scalar_lea.hbm %s5772_s3, 65536  ;;  %p4831_p1 = scmp.lt.u32.totalorder %s5113_s16, %s5772_s3 }
  0x47   : > { %p4827_p8 = pneg %p5788_p6  ;;  %p4832_p2 = scmp.lt.u32.totalorder %s4830_s22, %s4825_s19 }
  0x48   : > { %p4834_p5 = scmp.lt.u32.totalorder %s4825_s19, %s5113_s16 }
  0x49   : > { %p4828_p12 = pnand %p4827_p8, %p4826_p3  ;;  %p4833_p4 = por %p4832_p2, %p4831_p1 }
  0x4b   : > { %p4829_p13 = pneg %p4828_p12  ;;  %p4835_p7 = por %p4834_p5, %p4833_p4 }
  0x4d   : > { %p4836_p9 = pnand %p4835_p7, %p4829_p13 }
  0x4f   : > { %4839 = shalt.err (!%p4836_p9)
}
  0x50   : > { %s4840_s8 = scalar_lea.vmem %s5115_s13, 16384  ;;  %s4943_s21 = smov [#allocation4]  }
  0x51   : > { %p4841_p10 = scmp.ne.s32.totalorder %s5115_s13, %s4840_s8  ;;  %s4845_s17 = sshll.u32 %s4943_s21, 4  ;;  %s4846_s17 = int_to_ptr.vmem [resolvable:$false] %s4845_s17 }
  0x52   : > { %s4847_s23 = scalar_lea.vmem %s4846_s17, 32768  ;;  %p4848_p3 = scmp.lt.s32.totalorder %s5115_s13, %s4846_s17 }
  0x53   : > { %p4843_p0 = pnand %p4841_p10, %p4827_p8  ;;  %p4849_p12 = scmp.lt.s32.totalorder %s4847_s23, %s4840_s8 }
  0x55   : > { %p4844_p11 = pneg %p4843_p0  ;;  %p4850_p1 = por %p4849_p12, %p4848_p3 }
  0x57   : > { %p4851_p2 = pnand %p4850_p1, %p4844_p11 }
  0x59   : > { %4854 = shalt.err (!%p4851_p2)
}
  0x5a   : > { %s4944_s19 = smov 64   ;;  %s4945_s14 = smov 4  }
  0x5b   : > { %4543 = dma.hbm_to_vmem [thread:$0]  (!%p5788_p6), %s5113_s16, 16384, %s5115_s13, %s5122_s30, %s4944_s19, %s4944_s19, %s4945_s14  }
  0x5c   : > { %p5789_p8 = scmp.ne.s32.totalorder %s5785_s11, 0 }
  0x5d   : > { %s301_s22 = sand.u32 (!%p5789_p8), 1, %s4923_s25   ;;  %p5790_p13 = scmp.ne.s32.totalorder (!%p5789_p8), %s5784_s10, 0 }
  0x5e   : > { %299 = sbr.rel (%p5789_p8) target bundleno = 1055 (0x41f), region = 48  ;;  %s4005_s24 = sshll.u32 (!%p5789_p8), %s301_s22, 10 }
  0x5f   : > { %s302_s12 = scalar_lea.sflag (!%p5789_p8), [#allocation5], %s301_s22  ;;  %s5153_s8 = scalar_lea.vmem (!%p5789_p8), [#allocation4], %s4005_s24 }
  0x65   : > { %4906 = dma.done.wait (%p5790_p13), %s302_s12, 16384  }
  0x66   : > { %4908 = vsyncadd (%p5790_p13), %s302_s12, 4294950912  ;;  %p5791_p4 = scmp.ne.s32.totalorder %s5783_s9, 0 }
  0x68   : > { %4910 = dma.done.wait (%p5791_p4), [#allocation8], 32  }
  0x69   : > { %4912 = vsyncadd (%p5791_p4), [#allocation8], 4294967264  ;;  %p4008_p6 = scmp.ne.s32.totalorder %s4931_s27, 0 }
  0x6a   : > { %v4615_v0 = vld [vmem:[%s5769_s0 + $0x4] ss:$16 sps:$4 sm:$0xff] (!%p4008_p6)   ;;  %v4617_v1 = vld [vmem:[%s5769_s0 + $0xc] ss:$16 sps:$4 sm:$0xff] (!%p4008_p6)   ;;  %v4946_v2 = vmov (!%p4008_p6), 0   ;;  %vm394_vm0 = vcmask (!%p4008_p6), 130048  }
  0x6b   : > { %355 = sbr.rel (%p4008_p6) target bundleno = 451 (0x1c3), region = 64  ;;  %433 = vmatprep.mubr.bf16.mxu0 (!%p4008_p6), %v4946_v2  ;;  %486 = vmatprep.mubr.bf16.mxu1 (!%p4008_p6), %v4946_v2  ;;  %v4619_v3 = vld [vmem:[%s5769_s0] ss:$16 sps:$4 sm:$0xff] (!%p4008_p6)   ;;  %v4620_v4 = vld [vmem:[%s5769_s0 + $0x8] ss:$16 sps:$4 sm:$0xff] (!%p4008_p6)   ;;  %v4947_v23 = vmov (!%p4008_p6), 0.0  }
  0x6c   : > { %401 = vmatprep.subr.bf16.mxu0 (!%p4008_p6), %v4615_v0  ;;  %4613 = vset.pattern.permute.xlu0 (!%p4008_p6), %v4946_v2  ;;  %v5182_v5 = vld [vmem:[%s5770_s1] sm:$0xff] (!%p4008_p6)   ;;  %v4625_v8 = vld [vmem:[%s5769_s0 + $0x28] ss:$16 sps:$4 sm:$0xff] (!%p4008_p6)   ;;  %v4627_v9 = vld [vmem:[%s5769_s0 + $0x2c] ss:$16 sps:$4 sm:$0xff] (!%p4008_p6)  }
  0x6d   : > { %454 = vmatprep.subr.bf16.mxu1 (!%p4008_p6), %v4617_v1  ;;  %4614 = vset.pattern.permute.xlu1 (!%p4008_p6), %v4946_v2  ;;  %v4622_v6 = vld [vmem:[%s5769_s0 + $0x20] ss:$16 sps:$4 sm:$0xff] (!%p4008_p6)   ;;  %v4624_v7 = vld [vmem:[%s5769_s0 + $0x24] ss:$16 sps:$4 sm:$0xff] (!%p4008_p6)   ;;  %v4634_v11 = vld [vmem:[%s5769_s0 + $0x4c] ss:$16 sps:$4 sm:$0xff] (!%p4008_p6)  }
  0x6e   : > { %402 = vmatpush1.bf16.msra.mxu0 (!%p4008_p6), %v4619_v3  ;;  %455 = vmatpush1.bf16.msra.mxu1 (!%p4008_p6), %v4620_v4  ;;  %v4631_v10 = vld [vmem:[%s5769_s0 + $0x44] ss:$16 sps:$4 sm:$0xff] (!%p4008_p6)   ;;  %v4628_v12 = vld [vmem:[%s5770_s1 + $0x8] sm:$0xff] (!%p4008_p6)   ;;  %v951_v16 = vld [vmem:[%s5771_s2 + $0x18] sm:$0xff] (!%p4008_p6)  ;;  %2204 = vst [vmem:[#allocation3] sm:$0x3] (!%p4008_p6), %v4947_v23 }
  0x6f   : > { %532 = vmatprep.subr.bf16.mxu0 (!%p4008_p6), %v4624_v7  ;;  %585 = vmatprep.subr.bf16.mxu1 (!%p4008_p6), %v4627_v9  ;;  %v948_v13 = vld [vmem:[%s5771_s2] sm:$0xff] (!%p4008_p6)  ;;  %v950_v14 = vld [vmem:[%s5771_s2 + $0x10] sm:$0xff] (!%p4008_p6)  ;;  %v949_v15 = vld [vmem:[%s5771_s2 + $0x8] sm:$0xff] (!%p4008_p6) }
  0x70   : > { %954 = vperm.xlu0 (!%p4008_p6), %4613, %v948_v13   ;;  %964 = vperm.xlu1 (!%p4008_p6), %4614, %v950_v14   ;;  %v4629_v17 = vld [vmem:[%s5769_s0 + $0x40] ss:$16 sps:$4 sm:$0xff] (!%p4008_p6)   ;;  %v4632_v18 = vld [vmem:[%s5769_s0 + $0x48] ss:$16 sps:$4 sm:$0xff] (!%p4008_p6)   ;;  %v4637_v19 = vld [vmem:[%s5769_s0 + $0x64] ss:$16 sps:$4 sm:$0xff] (!%p4008_p6)  }
  0x71   : > { %4015 = vmatmul.mubr.msk.bf16.vlgmr.msra.gmra.mrb[0].mxu0 (!%p4008_p6), %vm394_vm0, %v5182_v5  ;;  %4017 = vmatmul.mubr.msk.bf16.vlgmr.msra.gmra.mrb[0].mxu1 (!%p4008_p6), %vm394_vm0, %v5182_v5  ;;  %v4640_v20 = vld [vmem:[%s5769_s0 + $0x6c] ss:$16 sps:$4 sm:$0xff] (!%p4008_p6)   ;;  %v4635_v21 = vld [vmem:[%s5769_s0 + $0x60] ss:$16 sps:$4 sm:$0xff] (!%p4008_p6)   ;;  %v4638_v22 = vld [vmem:[%s5769_s0 + $0x68] ss:$16 sps:$4 sm:$0xff] (!%p4008_p6)  }
  0x72   : > { %533 = vmatpush1.bf16.msra.mxu0 %v4622_v6  ;;  %586 = vmatpush1.bf16.msra.mxu1 %v4625_v8 }
  0x73   : > { %443 = vmatprep.mubr.bf16.mxu0 %v4946_v2  ;;  %496 = vmatprep.mubr.bf16.mxu1 %v4946_v2 }
  0x74   : > { %679 = vmatprep.subr.bf16.mxu0 %v4631_v10  ;;  %732 = vmatprep.subr.bf16.mxu1 %v4634_v11 }
  0x75   : > { %959 = vperm.xlu0 %4613, %v949_v15   ;;  %969 = vperm.xlu1 %4614, %v951_v16  }
  0x79   : > { %4016 = vmatmul.mubr.msk.bf16.gmra.mrb[4].mxu0 %vm394_vm0, %v4628_v12  ;;  %4018 = vmatmul.mubr.msk.bf16.gmra.mrb[4].mxu1 %vm394_vm0, %v4628_v12 }
  0x7a   : > { %564 = vmatprep.mubr.bf16.mxu0 %v4946_v2  ;;  %617 = vmatprep.mubr.bf16.mxu1 %v4946_v2 }
  0x81   : > { %4027 = vmatmul.mubr.msk.bf16.vlgmr.msra.gmra.mrb[8].mxu0 %vm394_vm0, %v5182_v5  ;;  %4029 = vmatmul.mubr.msk.bf16.vlgmr.msra.gmra.mrb[8].mxu1 %vm394_vm0, %v5182_v5 }
  0x82   : > { %680 = vmatpush1.bf16.msra.mxu0 %v4629_v17  ;;  %733 = vmatpush1.bf16.msra.mxu1 %v4632_v18 }
  0x83   : > { %574 = vmatprep.mubr.bf16.mxu0 %v4946_v2  ;;  %627 = vmatprep.mubr.bf16.mxu1 %v4946_v2 }
  0x84   : > { %826 = vmatprep.subr.bf16.mxu0 %v4637_v19  ;;  %879 = vmatprep.subr.bf16.mxu1 %v4640_v20 }
  0x89   : > { %4028 = vmatmul.mubr.msk.bf16.gmra.mrb[12].mxu0 %vm394_vm0, %v4628_v12  ;;  %4030 = vmatmul.mubr.msk.bf16.gmra.mrb[12].mxu1 %vm394_vm0, %v4628_v12 }
  0x8a   : > { %711 = vmatprep.mubr.bf16.mxu0 %v4946_v2  ;;  %764 = vmatprep.mubr.bf16.mxu1 %v4946_v2 }
  0x91   : > { %4039 = vmatmul.mubr.msk.bf16.vlgmr.msra.gmra.mrb[16].mxu0 %vm394_vm0, %v5182_v5  ;;  %4041 = vmatmul.mubr.msk.bf16.vlgmr.msra.gmra.mrb[16].mxu1 %vm394_vm0, %v5182_v5 }
  0x92   : > { %827 = vmatpush1.bf16.msra.mxu0 %v4635_v21  ;;  %880 = vmatpush1.bf16.msra.mxu1 %v4638_v22 }
  0x93   : > { %721 = vmatprep.mubr.bf16.mxu0 %v4946_v2  ;;  %774 = vmatprep.mubr.bf16.mxu1 %v4946_v2 }
  0x99   : > { %4040 = vmatmul.mubr.msk.bf16.gmra.mrb[20].mxu0 %vm394_vm0, %v4628_v12  ;;  %4042 = vmatmul.mubr.msk.bf16.gmra.mrb[20].mxu1 %vm394_vm0, %v4628_v12 }
  0x9a   : > { %858 = vmatprep.mubr.bf16.mxu0 %v4946_v2  ;;  %911 = vmatprep.mubr.bf16.mxu1 %v4946_v2 }
  0xa1   : > { %4051 = vmatmul.mubr.msk.bf16.vlgmr.msra.gmra.mrb[24].mxu0 %vm394_vm0, %v5182_v5  ;;  %4053 = vmatmul.mubr.msk.bf16.vlgmr.msra.gmra.mrb[24].mxu1 %vm394_vm0, %v5182_v5 }
  0xa2   : > { %868 = vmatprep.mubr.bf16.mxu0 %v4946_v2  ;;  %921 = vmatprep.mubr.bf16.mxu1 %v4946_v2 }
  0xa9   : > { %4052 = vmatmul.mubr.msk.bf16.gmra.mrb[28].mxu0 %vm394_vm0, %v4628_v12  ;;  %4054 = vmatmul.mubr.msk.bf16.gmra.mrb[28].mxu1 %vm394_vm0, %v4628_v12 }
 0x144   : > { %v435_v24 = vpop.f32.mrb[0].mxu0  ;;  %v488_v25 = vpop.f32.mrb[0].mxu1 }
 0x145   : > { %v437_v26 = vpop.f32.mrb[1].mxu0  ;;  %v490_v27 = vpop.f32.mrb[1].mxu1 }
 0x146   : > { %v439_v28 = vpop.f32.mrb[2].mxu0  ;;  %v492_v29 = vpop.f32.mrb[2].mxu1 }
 0x147   : > { %v441_v30 = vpop.f32.mrb[3].mxu0  ;;  %v494_v31 = vpop.f32.mrb[3].mxu1 }
 0x14c   : > { %v445_v32 = vpop.f32.mrb[4].mxu0  ;;  %v498_v33 = vpop.f32.mrb[4].mxu1 }
 0x14d   : > { %v5275_v34 = vpop.f32.mrb[5].mxu0  ;;  %v5277_v35 = vpop.f32.mrb[5].mxu1 }
 0x14e   : > { %v5279_v36 = vpop.f32.mrb[6].mxu0  ;;  %v5281_v37 = vpop.f32.mrb[6].mxu1 }
 0x14f   : > { %v5283_v38 = vpop.f32.mrb[7].mxu0  ;;  %v5285_v39 = vpop.f32.mrb[7].mxu1 }
 0x154   : > { %v566_v40 = vpop.f32.mrb[8].mxu0  ;;  %v619_v41 = vpop.f32.mrb[8].mxu1 }
 0x155   : > { %v638_v42 = vmax.f32 %v435_v24, %v566_v40  ;;  %v640_v43 = vmax.f32 %v488_v25, %v619_v41  ;;  %v568_v44 = vpop.f32.mrb[9].mxu0  ;;  %v621_v45 = vpop.f32.mrb[9].mxu1  ;;  %v4950_v41 = vmov 1966171168  }
 0x156   : > { %v639_v46 = vmax.f32 %v437_v26, %v568_v44  ;;  %v641_v47 = vmax.f32 %v490_v27, %v621_v45  ;;  %v570_v48 = vpop.f32.mrb[10].mxu0  ;;  %v623_v49 = vpop.f32.mrb[10].mxu1 }
 0x157   : > { %v642_v50 = vmax.f32 %v439_v28, %v570_v48  ;;  %v644_v51 = vmax.f32 %v492_v29, %v623_v49  ;;  %v572_v52 = vpop.f32.mrb[11].mxu0  ;;  %v625_v53 = vpop.f32.mrb[11].mxu1 }
 0x158   : > { %v643_v54 = vmax.f32 %v441_v30, %v572_v52  ;;  %v645_v55 = vmax.f32 %v494_v31, %v625_v53  ;;  %v955_v25 = vpop.permute.xlu0 %954 }
 0x15c   : > { %v576_v56 = vpop.f32.mrb[12].mxu0  ;;  %v629_v57 = vpop.f32.mrb[12].mxu1 }
 0x15d   : > { %v646_v58 = vmax.f32 %v445_v32, %v576_v56  ;;  %v648_v59 = vmax.f32 %v498_v33, %v629_v57  ;;  %v578_v60 = vpop.f32.mrb[13].mxu0  ;;  %v631_v61 = vpop.f32.mrb[13].mxu1  ;;  %v4948_v32 = vmov 1983009808  }
 0x15e   : > { %v647_v62 = vmax.f32 %v5275_v34, %v578_v60  ;;  %v649_v63 = vmax.f32 %v5277_v35, %v631_v61  ;;  %v580_v0 = vpop.f32.mrb[14].mxu0  ;;  %v633_v1 = vpop.f32.mrb[14].mxu1  ;;  %v1006_v33 = vunpack.c.l.s4 %v4948_v32  ;;  %v1008_v34 = vlaneseq }
 0x15f   : > { %v650_v2 = vmax.f32 %v5279_v36, %v580_v0  ;;  %v652_v3 = vmax.f32 %v5281_v37, %v633_v1  ;;  %v582_v4 = vpop.f32.mrb[15].mxu0  ;;  %v635_v5 = vpop.f32.mrb[15].mxu1 }
 0x160   : > { %v651_v6 = vmax.f32 %v5283_v38, %v582_v4  ;;  %v653_v7 = vmax.f32 %v5285_v39, %v635_v5  ;;  %v4949_v39 = vmov 1934713408   ;;  %v1007_v49 = vunpack.c.0.s8 %v1006_v33  ;;  %v960_v53 = vpop.permute.xlu0 %959 }
 0x161   : > { %v1037_v40 = vunpack.c.l.s4 %v4949_v39 }
 0x164   : > { %v713_v8 = vpop.f32.mrb[16].mxu0  ;;  %v766_v9 = vpop.f32.mrb[16].mxu1 }
 0x165   : > { %v785_v10 = vmax.f32 %v638_v42, %v713_v8  ;;  %v787_v11 = vmax.f32 %v640_v43, %v766_v9  ;;  %v715_v12 = vpop.f32.mrb[17].mxu0  ;;  %v768_v13 = vpop.f32.mrb[17].mxu1  ;;  %v1662_v42 = vunpack.c.l.s4 %v4950_v41 }
 0x166   : > { %v786_v14 = vmax.f32 %v639_v46, %v715_v12  ;;  %v788_v15 = vmax.f32 %v641_v47, %v768_v13  ;;  %v717_v16 = vpop.f32.mrb[18].mxu0  ;;  %v770_v17 = vpop.f32.mrb[18].mxu1 }
 0x167   : > { %v789_v18 = vmax.f32 %v642_v50, %v717_v16  ;;  %v791_v19 = vmax.f32 %v644_v51, %v770_v17  ;;  %v719_v20 = vpop.f32.mrb[19].mxu0  ;;  %v772_v21 = vpop.f32.mrb[19].mxu1  ;;  %v1009_v50 = vshrl.u32 %v1008_v34, 7  ;;  %v1038_v51 = vunpack.c.0.s8 %v1037_v40 }
 0x168   : > { %v790_v22 = vmax.f32 %v643_v54, %v719_v20  ;;  %v792_v24 = vmax.f32 %v645_v55, %v772_v21  ;;  %v1663_v52 = vunpack.c.0.s8 %v1662_v42 }
 0x169   : > { %v5309_v57 = vsub.s32 %v1007_v49, %v1009_v50  ;;  %v5311_v61 = vsub.s32 %v1038_v51, %v1009_v50 }
 0x16a   : > { %v5313_v0 = vsub.s32 %v1663_v52, %v1009_v50 }
 0x16c   : > { %v723_v26 = vpop.f32.mrb[20].mxu0  ;;  %v776_v27 = vpop.f32.mrb[20].mxu1 }
 0x16d   : > { %v5293_v28 = vmax.f32 %v646_v58, %v723_v26  ;;  %v5295_v29 = vmax.f32 %v648_v59, %v776_v27  ;;  %v725_v30 = vpop.f32.mrb[21].mxu0  ;;  %v778_v31 = vpop.f32.mrb[21].mxu1 }
 0x16e   : > { %v5297_v35 = vmax.f32 %v647_v62, %v725_v30  ;;  %v5299_v36 = vmax.f32 %v649_v63, %v778_v31  ;;  %v727_v37 = vpop.f32.mrb[22].mxu0  ;;  %v780_v38 = vpop.f32.mrb[22].mxu1 }
 0x16f   : > { %v5301_v43 = vmax.f32 %v650_v2, %v727_v37  ;;  %v5303_v44 = vmax.f32 %v652_v3, %v780_v38  ;;  %v729_v45 = vpop.f32.mrb[23].mxu0  ;;  %v782_v46 = vpop.f32.mrb[23].mxu1 }
 0x170   : > { %v5305_v47 = vmax.f32 %v651_v6, %v729_v45  ;;  %v5307_v48 = vmax.f32 %v653_v7, %v782_v46 }
 0x174   : > { %v860_v54 = vpop.f32.mrb[24].mxu0  ;;  %v913_v55 = vpop.f32.mrb[24].mxu1 }
 0x175   : > { %v932_v56 = vmax.f32 %v785_v10, %v860_v54  ;;  %v934_v58 = vmax.f32 %v787_v11, %v913_v55  ;;  %v862_v59 = vpop.f32.mrb[25].mxu0  ;;  %v915_v60 = vpop.f32.mrb[25].mxu1 }
 0x176   : > { %v933_v62 = vmax.f32 %v786_v14, %v862_v59  ;;  %v935_v63 = vmax.f32 %v788_v15, %v915_v60  ;;  %v864_v1 = vpop.f32.mrb[26].mxu0  ;;  %v917_v2 = vpop.f32.mrb[26].mxu1 }
 0x177   : > { %v972_v3 = vadd.f32 %v955_v25, %v932_v56  ;;  %v974_v4 = vadd.f32 %v955_v25, %v934_v58  ;;  %v936_v5 = vmax.f32 %v789_v18, %v864_v1  ;;  %v938_v6 = vmax.f32 %v791_v19, %v917_v2  ;;  %v866_v7 = vpop.f32.mrb[27].mxu0  ;;  %v919_v8 = vpop.f32.mrb[27].mxu1 }
 0x178   : > { %v973_v9 = vadd.f32 %v955_v25, %v933_v62  ;;  %v975_v10 = vadd.f32 %v955_v25, %v935_v63  ;;  %v937_v12 = vmax.f32 %v790_v22, %v866_v7  ;;  %v939_v11 = vmax.f32 %v792_v24, %v919_v8 }
 0x179   : > { %v988_v13 = vmax.f32 %v972_v3, 0.0  ;;  %v990_v16 = vmax.f32 %v974_v4, 0.0  ;;  %v5315_v17 = vadd.f32 %v960_v53, %v936_v5  ;;  %v5317_v14 = vadd.f32 %v960_v53, %v938_v6 }
 0x17a   : > { %v989_v15 = vmax.f32 %v973_v9, 0.0  ;;  %v991_v20 = vmax.f32 %v975_v10, 0.0  ;;  %v5319_v21 = vadd.f32 %v960_v53, %v937_v12  ;;  %v5321_v26 = vadd.f32 %v960_v53, %v939_v11 }
 0x17b   : > { %v1004_v18 = vcombine.high %v988_v13, %v4947_v23  ;;  %v1011_v19 = vrot.slane %v988_v13, %v5309_v57  ;;  %v1019_v25 = vcombine.high %v990_v16, %v4947_v23  ;;  %v1026_v22 = vrot.slane %v990_v16, %v5309_v57 }
 0x17c   : > { %v1268_v24 = vcombine.high %v989_v15, %v4947_v23  ;;  %v1275_v27 = vrot.slane %v989_v15, %v5309_v57  ;;  %v1283_v30 = vcombine.high %v991_v20, %v4947_v23  ;;  %v1290_v31 = vrot.slane %v991_v20, %v5309_v57  ;;  %v5331_v32 = vpop.f32.mrb[28].mxu0  ;;  %v5333_v33 = vpop.f32.mrb[28].mxu1 }
 0x17d   : > { %v1018_v34 = vrot.slane %v1004_v18, %v5309_v57  ;;  %v1033_v37 = vrot.slane %v1019_v25, %v5309_v57  ;;  %v1034_v38 = vcombine.low %v1011_v19, %v1026_v22  ;;  %v1035_v39 = vcombine.high %v1011_v19, %v1026_v22  ;;  %v5337_v40 = vpop.f32.mrb[29].mxu0  ;;  %v5339_v41 = vpop.f32.mrb[29].mxu1 }
 0x17e   : > { %v1282_v42 = vrot.slane %v1268_v24, %v5309_v57  ;;  %v1297_v45 = vrot.slane %v1283_v30, %v5309_v57  ;;  %v1298_v46 = vcombine.low %v1275_v27, %v1290_v31  ;;  %v1299_v49 = vcombine.high %v1275_v27, %v1290_v31  ;;  %v5343_v50 = vpop.f32.mrb[30].mxu0  ;;  %v5345_v51 = vpop.f32.mrb[30].mxu1 }
 0x17f   : > { %v1042_v52 = vrot.slane %v1034_v38, %v5311_v61  ;;  %v1049_v53 = vrot.slane %v1035_v39, %v5311_v61  ;;  %v1050_v54 = vcombine.low %v1018_v34, %v1033_v37  ;;  %v1051_v55 = vcombine.high %v1018_v34, %v1033_v37  ;;  %v5349_v56 = vpop.f32.mrb[31].mxu0  ;;  %v5351_v58 = vpop.f32.mrb[31].mxu1 }
 0x180   : > { %v1306_v59 = vrot.slane %v1298_v46, %v5311_v61  ;;  %v1313_v60 = vrot.slane %v1299_v49, %v5311_v61  ;;  %v1314_v62 = vcombine.low %v1282_v42, %v1297_v45  ;;  %v1315_v63 = vcombine.high %v1282_v42, %v1297_v45 }
 0x181   : > { %v1058_v1 = vrot.slane %v1050_v54, %v5311_v61  ;;  %v1065_v2 = vrot.slane %v1051_v55, %v5311_v61  ;;  %v1066_v3 = vcombine.high %v1042_v52, %v4947_v23  ;;  %v1067_v4 = vcombine.high %v1049_v53, %v4947_v23 }
 0x182   : > { %v1322_v5 = vrot.slane %v1314_v62, %v5311_v61  ;;  %v1329_v6 = vrot.slane %v1315_v63, %v5311_v61  ;;  %v1330_v7 = vcombine.high %v1306_v59, %v4947_v23  ;;  %v1331_v8 = vcombine.high %v1313_v60, %v4947_v23 }
 0x183   : > { %v1068_v9 = vcombine.high %v1058_v1, %v4947_v23  ;;  %v1069_v10 = vcombine.high %v1065_v2, %v4947_v23  ;;  %v4055_v12 = vpack.c.bf16 %v1306_v59, %v1042_v52  ;;  %v4057_v11 = vpack.c.bf16 %v1313_v60, %v1049_v53 }
 0x184   : > { %v1332_v13 = vcombine.high %v1322_v5, %v4947_v23  ;;  %v1333_v16 = vcombine.high %v1329_v6, %v4947_v23  ;;  %v4056_v15 = vpack.c.bf16 %v1330_v7, %v1066_v3  ;;  %v4058_v20 = vpack.c.bf16 %v1331_v8, %v1067_v4 }
 0x185   : > { %v1667_v18 = vrot.slane %v4055_v12, %v5313_v0  ;;  %v1697_v19 = vrot.slane %v4057_v11, %v5313_v0  ;;  %v4059_v25 = vpack.c.bf16 %v1322_v5, %v1058_v1  ;;  %v4061_v22 = vpack.c.bf16 %v1329_v6, %v1065_v2  ;;  %v965_v5 = vpop.permute.xlu1 %964 }
 0x186   : > { %v1682_v24 = vrot.slane %v4056_v15, %v5313_v0  ;;  %v1712_v27 = vrot.slane %v4058_v20, %v5313_v0  ;;  %v4060_v30 = vpack.c.bf16 %v1332_v13, %v1068_v9  ;;  %v4062_v31 = vpack.c.bf16 %v1333_v16, %v1069_v10 }
 0x187   : > { %v1727_v34 = vrot.slane %v4059_v25, %v5313_v0  ;;  %v1757_v37 = vrot.slane %v4061_v22, %v5313_v0  ;;  %4087 = vst.sshfl [vmem:[#allocation2] sm:$0x5 pattern:$0x73625140] %v1667_v18  ;;  %v992_v38 = vmax.f32 %v5315_v17, 0.0  ;;  %v993_v39 = vmax.f32 %v5319_v21, 0.0 }
 0x188   : > { %4089 = vst.sshfl [vmem:[#allocation2 + $0x4] sm:$0x5 pattern:$0x73625140] %v1697_v19  ;;  %v1742_v42 = vrot.slane %v4060_v30, %v5313_v0  ;;  %v1772_v45 = vrot.slane %v4062_v31, %v5313_v0  ;;  %v994_v46 = vmax.f32 %v5317_v14, 0.0  ;;  %v995_v49 = vmax.f32 %v5321_v26, 0.0 }
 0x189   : > { %4088 = vst.sshfl [vmem:[#allocation2 + $0x2] sm:$0x5 pattern:$0x73625140] %v1682_v24  ;;  %v1070_v52 = vcombine.high %v992_v38, %v4947_v23  ;;  %v1077_v53 = vrot.slane %v992_v38, %v5309_v57  ;;  %v1334_v17 = vcombine.high %v993_v39, %v4947_v23  ;;  %v1341_v21 = vrot.slane %v993_v39, %v5309_v57 }
 0x18a   : > { %4090 = vst.sshfl [vmem:[#allocation2 + $0x6] sm:$0x5 pattern:$0x73625140] %v1712_v27  ;;  %v1085_v54 = vcombine.high %v994_v46, %v4947_v23  ;;  %v1092_v55 = vrot.slane %v994_v46, %v5309_v57  ;;  %v1349_v14 = vcombine.high %v995_v49, %v4947_v23  ;;  %v1356_v26 = vrot.slane %v995_v49, %v5309_v57 }
 0x18b   : > { %4091 = vst.sshfl [vmem:[#allocation2 + $0x8] sm:$0x5 pattern:$0x73625140] %v1727_v34  ;;  %v1084_v59 = vrot.slane %v1070_v52, %v5309_v57  ;;  %v1348_v60 = vrot.slane %v1334_v17, %v5309_v57  ;;  %v940_v62 = vmax.f32 %v5293_v28, %v5331_v32  ;;  %v942_v63 = vmax.f32 %v5295_v29, %v5333_v33 }
 0x18c   : > { %4093 = vst.sshfl [vmem:[#allocation2 + $0xc] sm:$0x5 pattern:$0x73625140] %v1757_v37  ;;  %v1099_v1 = vrot.slane %v1085_v54, %v5309_v57  ;;  %v1100_v2 = vcombine.low %v1077_v53, %v1092_v55  ;;  %v1101_v3 = vcombine.high %v1077_v53, %v1092_v55  ;;  %v1363_v4 = vrot.slane %v1349_v14, %v5309_v57 }
 0x18d   : > { %4092 = vst.sshfl [vmem:[#allocation2 + $0xa] sm:$0x5 pattern:$0x73625140] %v1742_v42  ;;  %v1364_v6 = vcombine.low %v1341_v21, %v1356_v26  ;;  %v1365_v7 = vcombine.high %v1341_v21, %v1356_v26  ;;  %v980_v8 = vadd.f32 %v965_v5, %v940_v62  ;;  %v982_v9 = vadd.f32 %v965_v5, %v942_v63 }
 0x18e   : > { %4094 = vst.sshfl [vmem:[#allocation2 + $0xe] sm:$0x5 pattern:$0x73625140] %v1772_v45  ;;  %v1108_v10 = vrot.slane %v1100_v2, %v5311_v61  ;;  %v1115_v12 = vrot.slane %v1101_v3, %v5311_v61  ;;  %v1116_v11 = vcombine.low %v1084_v59, %v1099_v1  ;;  %v1117_v28 = vcombine.high %v1084_v59, %v1099_v1 }
 0x18f   : > { %v1372_v32 = vrot.slane %v1364_v6, %v5311_v61  ;;  %v1379_v29 = vrot.slane %v1365_v7, %v5311_v61  ;;  %v1380_v33 = vcombine.low %v1348_v60, %v1363_v4  ;;  %v1381_v13 = vcombine.high %v1348_v60, %v1363_v4 }
 0x190   : > { %v1124_v16 = vrot.slane %v1116_v11, %v5311_v61  ;;  %v1131_v15 = vrot.slane %v1117_v28, %v5311_v61  ;;  %v1132_v20 = vcombine.high %v1108_v10, %v4947_v23  ;;  %v1133_v18 = vcombine.high %v1115_v12, %v4947_v23 }
 0x191   : > { %v1388_v19 = vrot.slane %v1380_v33, %v5311_v61  ;;  %v1395_v25 = vrot.slane %v1381_v13, %v5311_v61  ;;  %v1396_v22 = vcombine.high %v1372_v32, %v4947_v23  ;;  %v1397_v24 = vcombine.high %v1379_v29, %v4947_v23 }
 0x192   : > { %v1134_v27 = vcombine.high %v1124_v16, %v4947_v23  ;;  %v1135_v30 = vcombine.high %v1131_v15, %v4947_v23  ;;  %v4063_v31 = vpack.c.bf16 %v1372_v32, %v1108_v10  ;;  %v4065_v34 = vpack.c.bf16 %v1379_v29, %v1115_v12  ;;  %v5433_v12 = vpop.permute.xlu1 %969 }
 0x193   : > { %v1398_v37 = vcombine.high %v1388_v19, %v4947_v23  ;;  %v1399_v38 = vcombine.high %v1395_v25, %v4947_v23  ;;  %v4064_v39 = vpack.c.bf16 %v1396_v22, %v1132_v20  ;;  %v4066_v42 = vpack.c.bf16 %v1397_v24, %v1133_v18 }
 0x194   : > { %v1787_v45 = vrot.slane %v4063_v31, %v5313_v0  ;;  %v1817_v46 = vrot.slane %v4065_v34, %v5313_v0  ;;  %v4067_v49 = vpack.c.bf16 %v1388_v19, %v1124_v16  ;;  %v4069_v52 = vpack.c.bf16 %v1395_v25, %v1131_v15 }
 0x195   : > { %v1802_v53 = vrot.slane %v4064_v39, %v5313_v0  ;;  %v1832_v17 = vrot.slane %v4066_v42, %v5313_v0  ;;  %v4068_v21 = vpack.c.bf16 %v1398_v37, %v1134_v27  ;;  %v4070_v54 = vpack.c.bf16 %v1399_v38, %v1135_v30 }
 0x196   : > { %v1847_v55 = vrot.slane %v4067_v49, %v5313_v0  ;;  %v1877_v14 = vrot.slane %v4069_v52, %v5313_v0  ;;  %4095 = vst.sshfl [vmem:[#allocation2 + $0x10] sm:$0x5 pattern:$0x73625140] %v1787_v45  ;;  %v996_v26 = vmax.f32 %v980_v8, 0.0  ;;  %v998_v59 = vmax.f32 %v982_v9, 0.0 }
 0x197   : > { %4097 = vst.sshfl [vmem:[#allocation2 + $0x14] sm:$0x5 pattern:$0x73625140] %v1817_v46  ;;  %v1862_v60 = vrot.slane %v4068_v21, %v5313_v0  ;;  %v1892_v62 = vrot.slane %v4070_v54, %v5313_v0  ;;  %v941_v63 = vmax.f32 %v5297_v35, %v5337_v40  ;;  %v943_v1 = vmax.f32 %v5299_v36, %v5339_v41 }
 0x198   : > { %4096 = vst.sshfl [vmem:[#allocation2 + $0x12] sm:$0x5 pattern:$0x73625140] %v1802_v53  ;;  %v1136_v2 = vcombine.high %v996_v26, %v4947_v23  ;;  %v1143_v3 = vrot.slane %v996_v26, %v5309_v57  ;;  %v1151_v4 = vcombine.high %v998_v59, %v4947_v23  ;;  %v1158_v6 = vrot.slane %v998_v59, %v5309_v57 }
 0x199   : > { %4098 = vst.sshfl [vmem:[#allocation2 + $0x16] sm:$0x5 pattern:$0x73625140] %v1832_v17  ;;  %v981_v7 = vadd.f32 %v965_v5, %v941_v63  ;;  %v983_v8 = vadd.f32 %v965_v5, %v943_v1  ;;  %v944_v35 = vmax.f32 %v5301_v43, %v5343_v50  ;;  %v946_v36 = vmax.f32 %v5303_v44, %v5345_v51 }
 0x19a   : > { %4099 = vst.sshfl [vmem:[#allocation2 + $0x18] sm:$0x5 pattern:$0x73625140] %v1847_v55  ;;  %v1150_v40 = vrot.slane %v1136_v2, %v5309_v57  ;;  %v1165_v41 = vrot.slane %v1151_v4, %v5309_v57  ;;  %v1166_v9 = vcombine.low %v1143_v3, %v1158_v6  ;;  %v1167_v10 = vcombine.high %v1143_v3, %v1158_v6 }
 0x19b   : > { %4101 = vst.sshfl [vmem:[#allocation2 + $0x1c] sm:$0x5 pattern:$0x73625140] %v1877_v14  ;;  %v997_v11 = vmax.f32 %v981_v7, 0.0  ;;  %v999_v28 = vmax.f32 %v983_v8, 0.0  ;;  %v984_v32 = vadd.f32 %v5433_v12, %v944_v35  ;;  %v986_v5 = vadd.f32 %v5433_v12, %v946_v36 }
 0x19c   : > { %4100 = vst.sshfl [vmem:[#allocation2 + $0x1a] sm:$0x5 pattern:$0x73625140] %v1862_v60  ;;  %v1174_v29 = vrot.slane %v1166_v9, %v5311_v61  ;;  %v1181_v43 = vrot.slane %v1167_v10, %v5311_v61  ;;  %v1182_v50 = vcombine.low %v1150_v40, %v1165_v41  ;;  %v1183_v44 = vcombine.high %v1150_v40, %v1165_v41 }
 0x19d   : > { %4102 = vst.sshfl [vmem:[#allocation2 + $0x1e] sm:$0x5 pattern:$0x73625140] %v1892_v62  ;;  %v1400_v51 = vcombine.high %v997_v11, %v4947_v23  ;;  %v1407_v33 = vrot.slane %v997_v11, %v5309_v57  ;;  %v1415_v13 = vcombine.high %v999_v28, %v4947_v23  ;;  %v1422_v16 = vrot.slane %v999_v28, %v5309_v57 }
 0x19e   : > { %v1190_v15 = vrot.slane %v1182_v50, %v5311_v61  ;;  %v1197_v20 = vrot.slane %v1183_v44, %v5311_v61  ;;  %v1198_v18 = vcombine.high %v1174_v29, %v4947_v23  ;;  %v1199_v19 = vcombine.high %v1181_v43, %v4947_v23 }
 0x19f   : > { %v1414_v25 = vrot.slane %v1400_v51, %v5309_v57  ;;  %v1429_v22 = vrot.slane %v1415_v13, %v5309_v57  ;;  %v1430_v24 = vcombine.low %v1407_v33, %v1422_v16  ;;  %v1431_v27 = vcombine.high %v1407_v33, %v1422_v16 }
 0x1a0   : > { %v1200_v30 = vcombine.high %v1190_v15, %v4947_v23  ;;  %v1201_v31 = vcombine.high %v1197_v20, %v4947_v23  ;;  %v1000_v34 = vmax.f32 %v984_v32, 0.0  ;;  %v1002_v37 = vmax.f32 %v986_v5, 0.0 }
 0x1a1   : > { %v1438_v38 = vrot.slane %v1430_v24, %v5311_v61  ;;  %v1445_v39 = vrot.slane %v1431_v27, %v5311_v61  ;;  %v1446_v42 = vcombine.low %v1414_v25, %v1429_v22  ;;  %v1447_v45 = vcombine.high %v1414_v25, %v1429_v22 }
 0x1a2   : > { %v1202_v46 = vcombine.high %v1000_v34, %v4947_v23  ;;  %v1209_v49 = vrot.slane %v1000_v34, %v5309_v57  ;;  %v1217_v52 = vcombine.high %v1002_v37, %v4947_v23  ;;  %v1224_v53 = vrot.slane %v1002_v37, %v5309_v57 }
 0x1a3   : > { %v1454_v17 = vrot.slane %v1446_v42, %v5311_v61  ;;  %v1461_v21 = vrot.slane %v1447_v45, %v5311_v61  ;;  %v1462_v54 = vcombine.high %v1438_v38, %v4947_v23  ;;  %v1463_v55 = vcombine.high %v1445_v39, %v4947_v23 }
 0x1a4   : > { %v4071_v14 = vpack.c.bf16 %v1438_v38, %v1174_v29  ;;  %v4073_v26 = vpack.c.bf16 %v1445_v39, %v1181_v43  ;;  %v1216_v59 = vrot.slane %v1202_v46, %v5309_v57  ;;  %v1231_v60 = vrot.slane %v1217_v52, %v5309_v57 }
 0x1a5   : > { %v1464_v62 = vcombine.high %v1454_v17, %v4947_v23  ;;  %v1465_v63 = vcombine.high %v1461_v21, %v4947_v23  ;;  %v4072_v1 = vpack.c.bf16 %v1462_v54, %v1198_v18  ;;  %v4074_v2 = vpack.c.bf16 %v1463_v55, %v1199_v19 }
 0x1a6   : > { %v1907_v3 = vrot.slane %v4071_v14, %v5313_v0  ;;  %v1937_v4 = vrot.slane %v4073_v26, %v5313_v0  ;;  %v4075_v6 = vpack.c.bf16 %v1454_v17, %v1190_v15  ;;  %v4077_v7 = vpack.c.bf16 %v1461_v21, %v1197_v20 }
 0x1a7   : > { %v1922_v8 = vrot.slane %v4072_v1, %v5313_v0  ;;  %v1952_v35 = vrot.slane %v4074_v2, %v5313_v0  ;;  %v4076_v36 = vpack.c.bf16 %v1464_v62, %v1200_v30  ;;  %v4078_v40 = vpack.c.bf16 %v1465_v63, %v1201_v31 }
 0x1a8   : > { %v1967_v41 = vrot.slane %v4075_v6, %v5313_v0  ;;  %v1997_v9 = vrot.slane %v4077_v7, %v5313_v0  ;;  %4103 = vst.sshfl [vmem:[#allocation2 + $0x20] sm:$0x5 pattern:$0x73625140] %v1907_v3  ;;  %v1232_v10 = vcombine.low %v1209_v49, %v1224_v53  ;;  %v1233_v11 = vcombine.high %v1209_v49, %v1224_v53 }
 0x1a9   : > { %4105 = vst.sshfl [vmem:[#allocation2 + $0x24] sm:$0x5 pattern:$0x73625140] %v1937_v4  ;;  %v1982_v28 = vrot.slane %v4076_v36, %v5313_v0  ;;  %v2012_v32 = vrot.slane %v4078_v40, %v5313_v0  ;;  %v1248_v5 = vcombine.low %v1216_v59, %v1231_v60  ;;  %v1249_v29 = vcombine.high %v1216_v59, %v1231_v60 }
 0x1aa   : > { %4104 = vst.sshfl [vmem:[#allocation2 + $0x22] sm:$0x5 pattern:$0x73625140] %v1922_v8  ;;  %v945_v43 = vmax.f32 %v5305_v47, %v5349_v56  ;;  %v947_v50 = vmax.f32 %v5307_v48, %v5351_v58  ;;  %v1240_v16 = vrot.slane %v1232_v10, %v5311_v61  ;;  %v1247_v15 = vrot.slane %v1233_v11, %v5311_v61 }
 0x1ab   : > { %4106 = vst.sshfl [vmem:[#allocation2 + $0x26] sm:$0x5 pattern:$0x73625140] %v1952_v35  ;;  %v1256_v56 = vrot.slane %v1248_v5, %v5311_v61  ;;  %v1263_v58 = vrot.slane %v1249_v29, %v5311_v61 }
 0x1ac   : > { %4107 = vst.sshfl [vmem:[#allocation2 + $0x28] sm:$0x5 pattern:$0x73625140] %v1967_v41  ;;  %v985_v44 = vadd.f32 %v5433_v12, %v945_v43  ;;  %v987_v51 = vadd.f32 %v5433_v12, %v947_v50  ;;  %v1264_v24 = vcombine.high %v1240_v16, %v4947_v23  ;;  %v1265_v27 = vcombine.high %v1247_v15, %v4947_v23 }
 0x1ad   : > { %4109 = vst.sshfl [vmem:[#allocation2 + $0x2c] sm:$0x5 pattern:$0x73625140] %v1997_v9  ;;  %v1266_v38 = vcombine.high %v1256_v56, %v4947_v23  ;;  %v1267_v39 = vcombine.high %v1263_v58, %v4947_v23 }
 0x1ae   : > { %4108 = vst.sshfl [vmem:[#allocation2 + $0x2a] sm:$0x5 pattern:$0x73625140] %v1982_v28  ;;  %v1001_v33 = vmax.f32 %v985_v44, 0.0  ;;  %v1003_v13 = vmax.f32 %v987_v51, 0.0 }
 0x1af   : > { %4110 = vst.sshfl [vmem:[#allocation2 + $0x2e] sm:$0x5 pattern:$0x73625140] %v2012_v32 }
 0x1b0   : > { %v1466_v20 = vcombine.high %v1001_v33, %v4947_v23  ;;  %v1473_v18 = vrot.slane %v1001_v33, %v5309_v57  ;;  %v1481_v47 = vcombine.high %v1003_v13, %v4947_v23  ;;  %v1488_v48 = vrot.slane %v1003_v13, %v5309_v57 }
 0x1b2   : > { %v1480_v12 = vrot.slane %v1466_v20, %v5309_v57  ;;  %v1495_v19 = vrot.slane %v1481_v47, %v5309_v57  ;;  %v1496_v25 = vcombine.low %v1473_v18, %v1488_v48  ;;  %v1497_v22 = vcombine.high %v1473_v18, %v1488_v48 }
 0x1b4   : > { %v1504_v30 = vrot.slane %v1496_v25, %v5311_v61  ;;  %v1511_v31 = vrot.slane %v1497_v22, %v5311_v61  ;;  %v1512_v34 = vcombine.low %v1480_v12, %v1495_v19  ;;  %v1513_v37 = vcombine.high %v1480_v12, %v1495_v19 }
 0x1b6   : > { %v1520_v42 = vrot.slane %v1512_v34, %v5311_v61  ;;  %v1527_v57 = vrot.slane %v1513_v37, %v5311_v61  ;;  %v1528_v45 = vcombine.high %v1504_v30, %v4947_v23  ;;  %v1529_v46 = vcombine.high %v1511_v31, %v4947_v23 }
 0x1b7   : > { %v4079_v49 = vpack.c.bf16 %v1504_v30, %v1240_v16  ;;  %v4081_v52 = vpack.c.bf16 %v1511_v31, %v1247_v15 }
 0x1b8   : > { %v1530_v53 = vcombine.high %v1520_v42, %v4947_v23  ;;  %v1531_v17 = vcombine.high %v1527_v57, %v4947_v23  ;;  %v4080_v21 = vpack.c.bf16 %v1528_v45, %v1264_v24  ;;  %v4082_v54 = vpack.c.bf16 %v1529_v46, %v1265_v27 }
 0x1b9   : > { %v2027_v55 = vrot.slane %v4079_v49, %v5313_v0  ;;  %v2057_v14 = vrot.slane %v4081_v52, %v5313_v0  ;;  %v4083_v26 = vpack.c.bf16 %v1520_v42, %v1256_v56  ;;  %v4085_v59 = vpack.c.bf16 %v1527_v57, %v1263_v58 }
 0x1ba   : > { %v2042_v61 = vrot.slane %v4080_v21, %v5313_v0  ;;  %v2072_v60 = vrot.slane %v4082_v54, %v5313_v0  ;;  %v4084_v62 = vpack.c.bf16 %v1530_v53, %v1266_v38  ;;  %v4086_v63 = vpack.c.bf16 %v1531_v17, %v1267_v39 }
 0x1bb   : > { %v2087_v1 = vrot.slane %v4083_v26, %v5313_v0  ;;  %v2117_v2 = vrot.slane %v4085_v59, %v5313_v0  ;;  %4111 = vst.sshfl [vmem:[#allocation2 + $0x30] sm:$0x5 pattern:$0x73625140] %v2027_v55 }
 0x1bc   : > { %4113 = vst.sshfl [vmem:[#allocation2 + $0x34] sm:$0x5 pattern:$0x73625140] %v2057_v14  ;;  %v2102_v23 = vrot.slane %v4084_v62, %v5313_v0  ;;  %v2132_v3 = vrot.slane %v4086_v63, %v5313_v0 }
 0x1bd   : > { %4112 = vst.sshfl [vmem:[#allocation2 + $0x32] sm:$0x5 pattern:$0x73625140] %v2042_v61 }
 0x1be   : > { %4114 = vst.sshfl [vmem:[#allocation2 + $0x36] sm:$0x5 pattern:$0x73625140] %v2072_v60 }
 0x1bf   : > { %4115 = vst.sshfl [vmem:[#allocation2 + $0x38] sm:$0x5 pattern:$0x73625140] %v2087_v1 }
 0x1c0   : > { %4117 = vst.sshfl [vmem:[#allocation2 + $0x3c] sm:$0x5 pattern:$0x73625140] %v2117_v2 }
 0x1c1   : > { %4116 = vst.sshfl [vmem:[#allocation2 + $0x3a] sm:$0x5 pattern:$0x73625140] %v2102_v23 }
 0x1c2   : > { %4118 = vst.sshfl [vmem:[#allocation2 + $0x3e] sm:$0x5 pattern:$0x73625140] %v2132_v3 }
 0x1c3 PF: > { %v4641_v4 = vld [vmem:[%s5153_s8 + $0x40] sm:$0xff]   ;;  %v4645_v8 = vld [vmem:[%s5153_s8 + $0x48] sm:$0xff]   ;;  %v4649_v41 = vld [vmem:[%s5153_s8 + $0x50] sm:$0xff]   ;;  %s4266_s12 = sshll.u32 %s4931_s27, 4  ;;  %v2484_v56 = vlaneseq  ;;  %v4951_v27 = vmov 1966171168  }
 0x1c4   : > { %v4642_v6 = vld [vmem:[%s5153_s8 + $0xc0] sm:$0xff]   ;;  %4267 = vmatprep.subr.bf16.mxu0 %v4641_v4  ;;  %v4646_v35 = vld [vmem:[%s5153_s8 + $0xc8] sm:$0xff]   ;;  %v4650_v9 = vld [vmem:[%s5153_s8 + $0xd0] sm:$0xff]   ;;  %s5542_s11 = scalar_lea.vmem [#allocation2], %s4266_s12  ;;  %v2482_v30 = vunpack.c.l.s4 %v4951_v27  ;;  %vm3761_vm1 = vcmask 1041408   ;;  %p4257_p5 = scmp.ne.s32.totalorder %s4931_s27, 3 }
 0x1c5   : > { %v4643_v0 = vld [vmem:[%s5153_s8] sm:$0xff]   ;;  %4289 = vmatprep.subr.bf16.mxu1 %v4642_v6  ;;  %v4647_v36 = vld [vmem:[%s5153_s8 + $0x8] sm:$0xff]   ;;  %v4651_v10 = vld [vmem:[%s5153_s8 + $0x10] sm:$0xff]   ;;  %v2485_v22 = vshrl.u32 %v2484_v56, 7  ;;  %vm4953_vm2 = vmmov (!%p4257_p5), 0   ;;  %vm3886_vm3 = vcmask (!%p4257_p5), 9216  }
 0x1c6   : > { %v4644_v7 = vld [vmem:[%s5153_s8 + $0x80] sm:$0xff]   ;;  %4268 = vmatpush3.bf16.msra.mxu0 %v4643_v0  ;;  %v4648_v40 = vld [vmem:[%s5153_s8 + $0x88] sm:$0xff]   ;;  %v4652_v11 = vld [vmem:[%s5153_s8 + $0x90] sm:$0xff]   ;;  %v2483_v38 = vunpack.c.0.s8 %v2482_v30 }
 0x1c7   : > { %4290 = vmatpush3.bf16.msra.mxu1 %v4644_v7  ;;  %4269 = vmatprep.subr.bf16.mxu0 %v4645_v8  ;;  %v4653_v28 = vld [vmem:[%s5153_s8 + $0x58] sm:$0xff]   ;;  %v4657_v43 = vld [vmem:[%s5153_s8 + $0x60] sm:$0xff]   ;;  %v4661_v33 = vld [vmem:[%s5153_s8 + $0x68] sm:$0xff]  }
 0x1c8   : > { %4291 = vmatprep.subr.bf16.mxu1 %v4646_v35  ;;  %v4654_v32 = vld [vmem:[%s5153_s8 + $0xd8] sm:$0xff]   ;;  %v4658_v50 = vld [vmem:[%s5153_s8 + $0xe0] sm:$0xff]   ;;  %v4662_v13 = vld [vmem:[%s5153_s8 + $0xe8] sm:$0xff]   ;;  %v5548_v57 = vsub.s32 %v2483_v38, %v2485_v22 }
 0x1c9   : > { %v4655_v5 = vld [vmem:[%s5153_s8 + $0x18] sm:$0xff]   ;;  %v4659_v44 = vld [vmem:[%s5153_s8 + $0x20] sm:$0xff]   ;;  %v4663_v16 = vld [vmem:[%s5153_s8 + $0x28] sm:$0xff]  }
 0x1ca   : > { %4270 = vmatpush3.bf16.msra.mxu0 %v4647_v36  ;;  %v4656_v29 = vld [vmem:[%s5153_s8 + $0x98] sm:$0xff]   ;;  %v4660_v51 = vld [vmem:[%s5153_s8 + $0xa0] sm:$0xff]   ;;  %v4664_v15 = vld [vmem:[%s5153_s8 + $0xa8] sm:$0xff]  }
 0x1cb   : > { %4292 = vmatpush3.bf16.msra.mxu1 %v4648_v40  ;;  %4271 = vmatprep.subr.bf16.mxu0 %v4649_v41  ;;  %v4665_v20 = vld [vmem:[%s5153_s8 + $0x70] sm:$0xff]   ;;  %v4669_v58 = vld [vmem:[%s5153_s8 + $0x78] sm:$0xff]   ;;  %v4121_v24 = vld.sshfl [vmem:[%s5542_s11] sm:$0x11 pattern:$0x75316420] }
 0x1cc   : > { %4293 = vmatprep.subr.bf16.mxu1 %v4650_v9  ;;  %v4666_v18 = vld [vmem:[%s5153_s8 + $0xf0] sm:$0xff]   ;;  %v4670_v12 = vld [vmem:[%s5153_s8 + $0xf8] sm:$0xff]   ;;  %v4138_v31 = vld.sshfl [vmem:[%s5542_s11 + $0x2] sm:$0x11 pattern:$0x75316420]  ;;  %v2480_v37 = vcombine.high %v4121_v24, %v4121_v24  ;;  %v2487_v53 = vrot.slane %v4121_v24, %v5548_v57 }
 0x1cd   : > { %v4667_v47 = vld [vmem:[%s5153_s8 + $0x30] sm:$0xff]   ;;  %v4671_v19 = vld [vmem:[%s5153_s8 + $0x38] sm:$0xff]   ;;  %v4673_v34 = vld [vmem:[%s5153_s8 + $0x140] sm:$0xff]   ;;  %v2641_v39 = vcombine.high %v4138_v31, %v4138_v31  ;;  %v2648_v17 = vrot.slane %v4138_v31, %v5548_v57 }
 0x1ce   : > { %4272 = vmatpush3.bf16.msra.mxu0 %v4651_v10  ;;  %v4668_v48 = vld [vmem:[%s5153_s8 + $0xb0] sm:$0xff]   ;;  %v4672_v25 = vld [vmem:[%s5153_s8 + $0xb8] sm:$0xff]   ;;  %v4674_v42 = vld [vmem:[%s5153_s8 + $0x1c0] sm:$0xff]   ;;  %v2494_v49 = vrot.slane %v2480_v37, %v5548_v57 }
 0x1cf   : > { %4294 = vmatpush3.bf16.msra.mxu1 %v4652_v11  ;;  %4273 = vmatprep.subr.bf16.mxu0 %v4653_v28  ;;  %v4675_v45 = vld [vmem:[%s5153_s8 + $0x100] sm:$0xff]   ;;  %v2655_v52 = vrot.slane %v2641_v39, %v5548_v57  ;;  %v4677_v21 = vld [vmem:[%s5153_s8 + $0x148] sm:$0xff]   ;;  %v4681_v26 = vld [vmem:[%s5153_s8 + $0x150] sm:$0xff]  }
 0x1d0   : > { %4295 = vmatprep.subr.bf16.mxu1 %v4654_v32  ;;  %v4676_v46 = vld [vmem:[%s5153_s8 + $0x180] sm:$0xff]   ;;  %v4678_v54 = vld [vmem:[%s5153_s8 + $0x1c8] sm:$0xff]   ;;  %2625 = vmatprep.mubr.bf16.mxu0 %v2494_v49  ;;  %v4682_v59 = vld [vmem:[%s5153_s8 + $0x1d0] sm:$0xff]  }
 0x1d1   : > { %2786 = vmatprep.mubr.bf16.mxu1 %v2655_v52  ;;  %v4679_v55 = vld [vmem:[%s5153_s8 + $0x108] sm:$0xff]   ;;  %v4683_v61 = vld [vmem:[%s5153_s8 + $0x110] sm:$0xff]   ;;  %v4685_v62 = vld [vmem:[%s5153_s8 + $0x158] sm:$0xff]  }
 0x1d2   : > { %4274 = vmatpush3.bf16.msra.mxu0 %v4655_v5  ;;  %v4680_v14 = vld [vmem:[%s5153_s8 + $0x188] sm:$0xff]   ;;  %v4684_v60 = vld [vmem:[%s5153_s8 + $0x190] sm:$0xff]   ;;  %v4686_v63 = vld [vmem:[%s5153_s8 + $0x1d8] sm:$0xff]  }
 0x1d3   : > { %4296 = vmatpush3.bf16.msra.mxu1 %v4656_v29  ;;  %4275 = vmatprep.subr.bf16.mxu0 %v4657_v43  ;;  %v4687_v1 = vld [vmem:[%s5153_s8 + $0x118] sm:$0xff]   ;;  %v4689_v23 = vld [vmem:[%s5153_s8 + $0x160] sm:$0xff]   ;;  %v4693_v0 = vld [vmem:[%s5153_s8 + $0x168] sm:$0xff]  }
 0x1d4   : > { %4297 = vmatprep.subr.bf16.mxu1 %v4658_v50  ;;  %v4688_v2 = vld [vmem:[%s5153_s8 + $0x198] sm:$0xff]   ;;  %v4690_v3 = vld [vmem:[%s5153_s8 + $0x1e0] sm:$0xff]   ;;  %v4694_v7 = vld [vmem:[%s5153_s8 + $0x1e8] sm:$0xff]  }
 0x1d5   : > { %v4691_v4 = vld [vmem:[%s5153_s8 + $0x120] sm:$0xff]   ;;  %v4695_v8 = vld [vmem:[%s5153_s8 + $0x128] sm:$0xff]   ;;  %v4697_v36 = vld [vmem:[%s5153_s8 + $0x170] sm:$0xff]  }
 0x1d6   : > { %4276 = vmatpush3.bf16.msra.mxu0 %v4659_v44  ;;  %v4692_v6 = vld [vmem:[%s5153_s8 + $0x1a0] sm:$0xff]   ;;  %v4696_v35 = vld [vmem:[%s5153_s8 + $0x1a8] sm:$0xff]   ;;  %v4698_v40 = vld [vmem:[%s5153_s8 + $0x1f0] sm:$0xff]  }
 0x1d7   : > { %4298 = vmatpush3.bf16.msra.mxu1 %v4660_v51  ;;  %4277 = vmatprep.subr.bf16.mxu0 %v4661_v33  ;;  %v4699_v41 = vld [vmem:[%s5153_s8 + $0x130] sm:$0xff]   ;;  %v4701_v10 = vld [vmem:[%s5153_s8 + $0x178] sm:$0xff]   ;;  %v4155_v5 = vld.sshfl [vmem:[%s5542_s11 + $0x4] sm:$0x11 pattern:$0x75316420] }
 0x1d8   : > { %4299 = vmatprep.subr.bf16.mxu1 %v4662_v13  ;;  %v4700_v9 = vld [vmem:[%s5153_s8 + $0x1b0] sm:$0xff]   ;;  %v4702_v11 = vld [vmem:[%s5153_s8 + $0x1f8] sm:$0xff]   ;;  %v2802_v29 = vcombine.high %v4155_v5, %v4155_v5  ;;  %v4172_v43 = vld.sshfl [vmem:[%s5542_s11 + $0x6] sm:$0x11 pattern:$0x75316420] }
 0x1d9   : > { %v4703_v28 = vld [vmem:[%s5153_s8 + $0x138] sm:$0xff]   ;;  %v4705_v50 = vld [vmem:[%s5153_s8 + $0x240] sm:$0xff]   ;;  %v2963_v51 = vcombine.high %v4172_v43, %v4172_v43  ;;  %v4711_v56 = vld [vmem:[%s5153_s8 + $0x208] sm:$0xff]  }
 0x1da   : > { %4278 = vmatpush3.bf16.msra.mxu0 %v4663_v16  ;;  %v4704_v32 = vld [vmem:[%s5153_s8 + $0x1b8] sm:$0xff]   ;;  %v4706_v44 = vld [vmem:[%s5153_s8 + $0x2c0] sm:$0xff]   ;;  %v2816_v33 = vrot.slane %v2802_v29, %v5548_v57  ;;  %v4716_v22 = vld [vmem:[%s5153_s8 + $0x290] sm:$0xff]  }
 0x1db   : > { %4300 = vmatpush3.bf16.msra.mxu1 %v4664_v15  ;;  %4279 = vmatprep.subr.bf16.mxu0 %v4665_v20  ;;  %v4707_v13 = vld [vmem:[%s5153_s8 + $0x200] sm:$0xff]   ;;  %v2977_v16 = vrot.slane %v2963_v51, %v5548_v57  ;;  %v2809_v15 = vrot.slane %v4155_v5, %v5548_v57  ;;  %v2970_v20 = vrot.slane %v4172_v43, %v5548_v57  ;;  %v4717_v24 = vld [vmem:[%s5153_s8 + $0x258] sm:$0xff]   ;;  %v4728_v49 = vld [vmem:[%s5153_s8 + $0x2a8] sm:$0xff]  }
 0x1dc   : > { %4301 = vmatprep.subr.bf16.mxu1 %v4666_v18  ;;  %v4708_v18 = vld [vmem:[%s5153_s8 + $0x280] sm:$0xff]   ;;  %v4718_v27 = vld [vmem:[%s5153_s8 + $0x2d8] sm:$0xff]   ;;  %v4729_v52 = vld [vmem:[%s5153_s8 + $0x270] sm:$0xff]  }
 0x1dd   : > { %v4719_v30 = vld [vmem:[%s5153_s8 + $0x218] sm:$0xff]   ;;  %v4722_v37 = vld [vmem:[%s5153_s8 + $0x2e0] sm:$0xff]   ;;  %v4757_v51 = vld [vmem:[%s5153_s8 + $0x368] sm:$0xff]  }
 0x1de   : > { %4280 = vmatpush3.bf16.msra.mxu0 %v4667_v47  ;;  %v4709_v47 = vld [vmem:[%s5153_s8 + $0x248] sm:$0xff]   ;;  %v4720_v31 = vld [vmem:[%s5153_s8 + $0x298] sm:$0xff]   ;;  %v4723_v38 = vld [vmem:[%s5153_s8 + $0x220] sm:$0xff]  }
 0x1df   : > { %4302 = vmatpush3.bf16.msra.mxu1 %v4668_v48  ;;  %4281 = vmatprep.subr.bf16.mxu0 %v4669_v58  ;;  %v4710_v48 = vld [vmem:[%s5153_s8 + $0x2c8] sm:$0xff]   ;;  %v4724_v39 = vld [vmem:[%s5153_s8 + $0x2a0] sm:$0xff]   ;;  %v4752_v5 = vld [vmem:[%s5153_s8 + $0x398] sm:$0xff]  }
 0x1e0   : > { %4303 = vmatprep.subr.bf16.mxu1 %v4670_v12  ;;  %v4712_v58 = vld [vmem:[%s5153_s8 + $0x288] sm:$0xff]   ;;  %v4713_v12 = vld [vmem:[%s5153_s8 + $0x250] sm:$0xff]   ;;  %v4753_v29 = vld [vmem:[%s5153_s8 + $0x360] sm:$0xff]  }
 0x1e1   : > { %v4754_v43 = vld [vmem:[%s5153_s8 + $0x3e0] sm:$0xff]  }
 0x1e2   : > { %4282 = vmatpush3.bf16.msra.mxu0 %v4671_v19  ;;  %v4714_v19 = vld [vmem:[%s5153_s8 + $0x2d0] sm:$0xff]  }
 0x1e3   : > { %4304 = vmatpush3.bf16.msra.mxu1 %v4672_v25  ;;  %4311 = vmatprep.subr.bf16.mxu0 %v4673_v34  ;;  %v4715_v25 = vld [vmem:[%s5153_s8 + $0x210] sm:$0xff]   ;;  %v4721_v34 = vld [vmem:[%s5153_s8 + $0x260] sm:$0xff]  }
 0x1e4   : > { %4333 = vmatprep.subr.bf16.mxu1 %v4674_v42  ;;  %v4725_v42 = vld [vmem:[%s5153_s8 + $0x268] sm:$0xff]  }
 0x1e5   : > { %2626 = vmatmul.mubr.bf16.vlgmr.msra.gmra.mrb[0].mxu0 %v2487_v53  ;;  %v4730_v53 = vld [vmem:[%s5153_s8 + $0x2f0] sm:$0xff]  }
 0x1e6   : > { %2787 = vmatmul.mubr.bf16.vlgmr.msra.gmra.mrb[0].mxu1 %v2648_v17  ;;  %4312 = vmatpush3.bf16.msra.mxu0 %v4675_v45  ;;  %v4726_v45 = vld [vmem:[%s5153_s8 + $0x2e8] sm:$0xff]   ;;  %v4731_v17 = vld [vmem:[%s5153_s8 + $0x230] sm:$0xff]  }
 0x1e7   : > { %4334 = vmatpush3.bf16.msra.mxu1 %v4676_v46  ;;  %4313 = vmatprep.subr.bf16.mxu0 %v4677_v21  ;;  %v4727_v46 = vld [vmem:[%s5153_s8 + $0x228] sm:$0xff]   ;;  %v4732_v21 = vld [vmem:[%s5153_s8 + $0x2b0] sm:$0xff]  }
 0x1e8   : > { %4335 = vmatprep.subr.bf16.mxu1 %v4678_v54  ;;  %2947 = vmatprep.mubr.bf16.mxu0 %v2816_v33  ;;  %v4733_v54 = vld [vmem:[%s5153_s8 + $0x278] sm:$0xff]   ;;  %v4758_v33 = vld [vmem:[%s5153_s8 + $0x3e8] sm:$0xff]  }
 0x1e9   : > { %3108 = vmatprep.mubr.bf16.mxu1 %v2977_v16  ;;  %v4760_v16 = vld [vmem:[%s5153_s8 + $0x3a8] sm:$0xff]  }
 0x1ea   : > { %4314 = vmatpush3.bf16.msra.mxu0 %v4679_v55  ;;  %v4734_v55 = vld [vmem:[%s5153_s8 + $0x2f8] sm:$0xff]  }
 0x1eb   : > { %4336 = vmatpush3.bf16.msra.mxu1 %v4680_v14  ;;  %4315 = vmatprep.subr.bf16.mxu0 %v4681_v26  ;;  %v4735_v14 = vld [vmem:[%s5153_s8 + $0x238] sm:$0xff]  }
 0x1ec   : > { %4337 = vmatprep.subr.bf16.mxu1 %v4682_v59  ;;  %v4736_v26 = vld [vmem:[%s5153_s8 + $0x2b8] sm:$0xff]   ;;  %v4189_v59 = vld.sshfl [vmem:[%s5542_s11 + $0x8] sm:$0x11 pattern:$0x75316420] }
 0x1ee   : > { %4316 = vmatpush3.bf16.msra.mxu0 %v4683_v61  ;;  %v3124_v61 = vcombine.high %v4189_v59, %v4189_v59 }
 0x1ef   : > { %4338 = vmatpush3.bf16.msra.mxu1 %v4684_v60  ;;  %4317 = vmatprep.subr.bf16.mxu0 %v4685_v62  ;;  %v4206_v60 = vld.sshfl [vmem:[%s5542_s11 + $0xa] sm:$0x11 pattern:$0x75316420]  ;;  %v4737_v62 = vld [vmem:[%s5153_s8 + $0x340] sm:$0xff]  }
 0x1f0   : > { %4339 = vmatprep.subr.bf16.mxu1 %v4686_v63  ;;  %v4738_v63 = vld [vmem:[%s5153_s8 + $0x3c0] sm:$0xff]  }
 0x1f2   : > { %4318 = vmatpush3.bf16.msra.mxu0 %v4687_v1  ;;  %v3285_v1 = vcombine.high %v4206_v60, %v4206_v60 }
 0x1f3   : > { %4340 = vmatpush3.bf16.msra.mxu1 %v4688_v2  ;;  %4319 = vmatprep.subr.bf16.mxu0 %v4689_v23  ;;  %v3138_v2 = vrot.slane %v3124_v61, %v5548_v57  ;;  %v3131_v23 = vrot.slane %v4189_v59, %v5548_v57 }
 0x1f4   : > { %4341 = vmatprep.subr.bf16.mxu1 %v4690_v3  ;;  %v3292_v3 = vrot.slane %v4206_v60, %v5548_v57 }
 0x1f6   : > { %4320 = vmatpush3.bf16.msra.mxu0 %v4691_v4  ;;  %v4739_v4 = vld [vmem:[%s5153_s8 + $0x300] sm:$0xff]  }
 0x1f7   : > { %4342 = vmatpush3.bf16.msra.mxu1 %v4692_v6  ;;  %4321 = vmatprep.subr.bf16.mxu0 %v4693_v0  ;;  %v3299_v6 = vrot.slane %v3285_v1, %v5548_v57  ;;  %v4740_v0 = vld [vmem:[%s5153_s8 + $0x380] sm:$0xff]  }
 0x1f8   : > { %4343 = vmatprep.subr.bf16.mxu1 %v4694_v7  ;;  %v4741_v7 = vld [vmem:[%s5153_s8 + $0x348] sm:$0xff]  }
 0x1fa   : > { %4322 = vmatpush3.bf16.msra.mxu0 %v4695_v8  ;;  %v4742_v8 = vld [vmem:[%s5153_s8 + $0x3c8] sm:$0xff]  }
 0x1fb   : > { %4344 = vmatpush3.bf16.msra.mxu1 %v4696_v35  ;;  %4323 = vmatprep.subr.bf16.mxu0 %v4697_v36  ;;  %v4743_v35 = vld [vmem:[%s5153_s8 + $0x308] sm:$0xff]  }
 0x1fc   : > { %4345 = vmatprep.subr.bf16.mxu1 %v4698_v40  ;;  %v4744_v36 = vld [vmem:[%s5153_s8 + $0x388] sm:$0xff]   ;;  %v4745_v40 = vld [vmem:[%s5153_s8 + $0x350] sm:$0xff]  }
 0x1fe   : > { %4324 = vmatpush3.bf16.msra.mxu0 %v4699_v41  ;;  %v4746_v41 = vld [vmem:[%s5153_s8 + $0x3d0] sm:$0xff]  }
 0x1ff   : > { %4346 = vmatpush3.bf16.msra.mxu1 %v4700_v9  ;;  %4325 = vmatprep.subr.bf16.mxu0 %v4701_v10  ;;  %v4747_v9 = vld [vmem:[%s5153_s8 + $0x310] sm:$0xff]  }
 0x200   : > { %4347 = vmatprep.subr.bf16.mxu1 %v4702_v11  ;;  %v4748_v10 = vld [vmem:[%s5153_s8 + $0x390] sm:$0xff]   ;;  %v4749_v11 = vld [vmem:[%s5153_s8 + $0x358] sm:$0xff]  }
 0x202   : > { %4326 = vmatpush3.bf16.msra.mxu0 %v4703_v28  ;;  %v4750_v28 = vld [vmem:[%s5153_s8 + $0x3d8] sm:$0xff]  }
 0x203   : > { %4348 = vmatpush3.bf16.msra.mxu1 %v4704_v32  ;;  %4355 = vmatprep.subr.bf16.mxu0 %v4705_v50  ;;  %v4751_v32 = vld [vmem:[%s5153_s8 + $0x318] sm:$0xff]   ;;  %v4755_v50 = vld [vmem:[%s5153_s8 + $0x320] sm:$0xff]  }
 0x204   : > { %4377 = vmatprep.subr.bf16.mxu1 %v4706_v44  ;;  %v4756_v44 = vld [vmem:[%s5153_s8 + $0x3a0] sm:$0xff]  }
 0x205   : > { %2948 = vmatmul.mubr.bf16.vlgmr.msra.gmra.mrb[4].mxu0 %v2809_v15  ;;  %v4761_v15 = vld [vmem:[%s5153_s8 + $0x370] sm:$0xff]  }
 0x206   : > { %3109 = vmatmul.mubr.bf16.vlgmr.msra.gmra.mrb[4].mxu1 %v2970_v20  ;;  %4356 = vmatpush3.bf16.msra.mxu0 %v4707_v13  ;;  %v4759_v13 = vld [vmem:[%s5153_s8 + $0x328] sm:$0xff]   ;;  %v4762_v20 = vld [vmem:[%s5153_s8 + $0x3f0] sm:$0xff]  }
 0x207   : > { %4378 = vmatpush3.bf16.msra.mxu1 %v4708_v18  ;;  %4357 = vmatprep.subr.bf16.mxu0 %v4709_v47  ;;  %v4763_v18 = vld [vmem:[%s5153_s8 + $0x330] sm:$0xff]  }
 0x208   : > { %4379 = vmatprep.subr.bf16.mxu1 %v4710_v48  ;;  %3269 = vmatprep.mubr.bf16.mxu0 %v3138_v2  ;;  %v4764_v47 = vld [vmem:[%s5153_s8 + $0x3b0] sm:$0xff]   ;;  %v4765_v48 = vld [vmem:[%s5153_s8 + $0x378] sm:$0xff]  }
 0x209   : > { %3430 = vmatprep.mubr.bf16.mxu1 %v3299_v6 }
 0x20a   : > { %4358 = vmatpush3.bf16.msra.mxu0 %v4711_v56  ;;  %v4766_v56 = vld [vmem:[%s5153_s8 + $0x3f8] sm:$0xff]  }
 0x20b   : > { %4380 = vmatpush3.bf16.msra.mxu1 %v4712_v58  ;;  %4359 = vmatprep.subr.bf16.mxu0 %v4713_v12  ;;  %v4767_v58 = vld [vmem:[%s5153_s8 + $0x338] sm:$0xff]  }
 0x20c   : > { %4381 = vmatprep.subr.bf16.mxu1 %v4714_v19  ;;  %v4768_v12 = vld [vmem:[%s5153_s8 + $0x3b8] sm:$0xff]   ;;  %v4223_v19 = vld.sshfl [vmem:[%s5542_s11 + $0xc] sm:$0x11 pattern:$0x75316420] }
 0x20e   : > { %4360 = vmatpush3.bf16.msra.mxu0 %v4715_v25  ;;  %v3446_v25 = vcombine.high %v4223_v19, %v4223_v19 }
 0x20f   : > { %4382 = vmatpush3.bf16.msra.mxu1 %v4716_v22  ;;  %4361 = vmatprep.subr.bf16.mxu0 %v4717_v24  ;;  %v4240_v22 = vld.sshfl [vmem:[%s5542_s11 + $0xe] sm:$0x11 pattern:$0x75316420] }
 0x210   : > { %4383 = vmatprep.subr.bf16.mxu1 %v4718_v27  ;;  %v3607_v24 = vcombine.high %v4240_v22, %v4240_v22  ;;  %v3453_v27 = vrot.slane %v4223_v19, %v5548_v57 }
 0x212   : > { %4362 = vmatpush3.bf16.msra.mxu0 %v4719_v30  ;;  %v3460_v30 = vrot.slane %v3446_v25, %v5548_v57  ;;  %v3793_v25 = vld [vmem:[%s5774_s5] sm:$0xff] (!%p4257_p5) }
 0x213   : > { %4384 = vmatpush3.bf16.msra.mxu1 %v4720_v31  ;;  %4363 = vmatprep.subr.bf16.mxu0 %v4721_v34  ;;  %v3614_v31 = vrot.slane %v4240_v22, %v5548_v57  ;;  %v3621_v34 = vrot.slane %v3607_v24, %v5548_v57  ;;  %v3794_v22 = vld [vmem:[%s5774_s5 + $0x8] sm:$0xff] (!%p4257_p5)  ;;  %v3795_v24 = vld [vmem:[%s5774_s5 + $0x10] sm:$0xff] (!%p4257_p5) }
 0x214   : > { %4385 = vmatprep.subr.bf16.mxu1 %v4722_v37 }
 0x216   : > { %4364 = vmatpush3.bf16.msra.mxu0 %v4723_v38 }
 0x217   : > { %4386 = vmatpush3.bf16.msra.mxu1 %v4724_v39  ;;  %4365 = vmatprep.subr.bf16.mxu0 %v4725_v42 }
 0x218   : > { %4387 = vmatprep.subr.bf16.mxu1 %v4726_v45 }
 0x21a   : > { %4366 = vmatpush3.bf16.msra.mxu0 %v4727_v46 }
 0x21b   : > { %4388 = vmatpush3.bf16.msra.mxu1 %v4728_v49  ;;  %4367 = vmatprep.subr.bf16.mxu0 %v4729_v52 }
 0x21c   : > { %4389 = vmatprep.subr.bf16.mxu1 %v4730_v53 }
 0x21e   : > { %4368 = vmatpush3.bf16.msra.mxu0 %v4731_v17 }
 0x21f   : > { %4390 = vmatpush3.bf16.msra.mxu1 %v4732_v21  ;;  %4369 = vmatprep.subr.bf16.mxu0 %v4733_v54 }
 0x220   : > { %4391 = vmatprep.subr.bf16.mxu1 %v4734_v55 }
 0x222   : > { %4370 = vmatpush3.bf16.msra.mxu0 %v4735_v14 }
 0x223   : > { %4392 = vmatpush3.bf16.msra.mxu1 %v4736_v26  ;;  %4399 = vmatprep.subr.bf16.mxu0 %v4737_v62 }
 0x224   : > { %4421 = vmatprep.subr.bf16.mxu1 %v4738_v63 }
 0x225   : > { %3270 = vmatmul.mubr.bf16.vlgmr.msra.gmra.mrb[8].mxu0 %v3131_v23 }
 0x226   : > { %3431 = vmatmul.mubr.bf16.vlgmr.msra.gmra.mrb[8].mxu1 %v3292_v3  ;;  %4400 = vmatpush3.bf16.msra.mxu0 %v4739_v4 }
 0x227   : > { %4422 = vmatpush3.bf16.msra.mxu1 %v4740_v0  ;;  %4401 = vmatprep.subr.bf16.mxu0 %v4741_v7 }
 0x228   : > { %4423 = vmatprep.subr.bf16.mxu1 %v4742_v8  ;;  %3591 = vmatprep.mubr.bf16.mxu0 %v3460_v30  ;;  %v4496_v30 = vpack.c.bf16 (!%p4257_p5), %v3794_v22, %v3793_v25 }
 0x229   : > { %3752 = vmatprep.mubr.bf16.mxu1 %v3621_v34  ;;  %v4954_v34 = vmov (!%p4257_p5), 0.0  }
 0x22a   : > { %4402 = vmatpush3.bf16.msra.mxu0 %v4743_v35 }
 0x22b   : > { %4424 = vmatpush3.bf16.msra.mxu1 %v4744_v36  ;;  %4403 = vmatprep.subr.bf16.mxu0 %v4745_v40 }
 0x22c   : > { %4425 = vmatprep.subr.bf16.mxu1 %v4746_v41 }
 0x22e   : > { %4404 = vmatpush3.bf16.msra.mxu0 %v4747_v9 }
 0x22f   : > { %4426 = vmatpush3.bf16.msra.mxu1 %v4748_v10  ;;  %4405 = vmatprep.subr.bf16.mxu0 %v4749_v11 }
 0x230   : > { %4427 = vmatprep.subr.bf16.mxu1 %v4750_v28 }
 0x232   : > { %4406 = vmatpush3.bf16.msra.mxu0 %v4751_v32 }
 0x233   : > { %4428 = vmatpush3.bf16.msra.mxu1 %v4752_v5  ;;  %4407 = vmatprep.subr.bf16.mxu0 %v4753_v29 }
 0x234   : > { %4429 = vmatprep.subr.bf16.mxu1 %v4754_v43 }
 0x236   : > { %4408 = vmatpush3.bf16.msra.mxu0 %v4755_v50 }
 0x237   : > { %4430 = vmatpush3.bf16.msra.mxu1 %v4756_v44  ;;  %4409 = vmatprep.subr.bf16.mxu0 %v4757_v51 }
 0x238   : > { %4431 = vmatprep.subr.bf16.mxu1 %v4758_v33 }
 0x23a   : > { %4410 = vmatpush3.bf16.msra.mxu0 %v4759_v13 }
 0x23b   : > { %4432 = vmatpush3.bf16.msra.mxu1 %v4760_v16  ;;  %4411 = vmatprep.subr.bf16.mxu0 %v4761_v15 }
 0x23c   : > { %4433 = vmatprep.subr.bf16.mxu1 %v4762_v20 }
 0x23e   : > { %4412 = vmatpush3.bf16.msra.mxu0 %v4763_v18 }
 0x23f   : > { %4434 = vmatpush3.bf16.msra.mxu1 %v4764_v47  ;;  %4413 = vmatprep.subr.bf16.mxu0 %v4765_v48 }
 0x240   : > { %4435 = vmatprep.subr.bf16.mxu1 %v4766_v56 }
 0x242   : > { %4414 = vmatpush3.bf16.msra.mxu0 %v4767_v58  ;;  %v3760_v58 = vld [vmem:[#allocation3] sm:$0x3] }
 0x243   : > { %4436 = vmatpush3.bf16.msra.mxu1 %v4768_v12 }
 0x245   : > { %3592 = vmatmul.mubr.bf16.vlgmr.msra.gmra.mrb[12].mxu0 %v3453_v27  ;;  %v4952_v27 = vmov (!%p4257_p5), 0.0|0.0  }
 0x246   : > { %3753 = vmatmul.mubr.bf16.vlgmr.msra.gmra.mrb[12].mxu1 %v3614_v31  ;;  %4495 = vmatprep.subr.bf16.mxu0 (!%p4257_p5), %v4952_v27  ;;  %v3796_v31 = vld [vmem:[%s5774_s5 + $0x18] sm:$0xff] (!%p4257_p5) }
 0x247   : > { %4492 = vmatprep.mubr.msk.f32.mxu0 (!%p4257_p5), %vm4953_vm2, %v4954_v34  ;;  %4497 = vmatpush3.bf16.msra.mxu0 (!%p4257_p5), %v4496_v30 }
 0x248   : > { %4498 = vmatprep.subr.bf16.mxu0 (!%p4257_p5), %v4952_v27 }
 0x2b8   : > { %v4283_v37 = vpop.f32.mrb[0].mxu0 }
 0x2b9   : > { %v4305_v38 = vpop.f32.mrb[0].mxu1  ;;  %v4284_v39 = vpop.f32.mrb[1].mxu0 }
 0x2ba   : > { %v4306_v42 = vpop.f32.mrb[1].mxu1  ;;  %v4285_v45 = vadd.f32 %v4284_v39, %v4283_v37  ;;  %v4286_v49 = vpop.f32.mrb[2].mxu0  ;;  %v4499_v37 = vpack.c.bf16 (!%p4257_p5), %v3796_v31, %v3795_v24  ;;  %v3798_v39 = vld [vmem:[%s5774_s5 + $0x28] sm:$0xff] (!%p4257_p5) }
 0x2bb   : > { %v4307_v46 = vadd.f32 %v4306_v42, %v4305_v38  ;;  %v4308_v52 = vpop.f32.mrb[2].mxu1  ;;  %v4287_v53 = vpop.f32.mrb[3].mxu0  ;;  %v3797_v38 = vld [vmem:[%s5774_s5 + $0x20] sm:$0xff] (!%p4257_p5) }
 0x2bc   : > { %v4309_v17 = vpop.f32.mrb[3].mxu1  ;;  %v3762_v21 = vsel %vm3761_vm1, %v4285_v45, 0.0  ;;  %4500 = vmatpush3.bf16.msra.mxu0 (!%p4257_p5), %v4499_v37  ;;  %v4502_v42 = vpack.c.bf16 (!%p4257_p5), %v3798_v39, %v3797_v38  ;;  %v3799_v45 = vld [vmem:[%s5774_s5 + $0x30] sm:$0xff] (!%p4257_p5)  ;;  %v3801_v52 = vld [vmem:[%s5774_s5 + $0x40] sm:$0xff] (!%p4257_p5)  ;;  %v3802_v53 = vld [vmem:[%s5774_s5 + $0x48] sm:$0xff] (!%p4257_p5) }
 0x2bd   : > { %v3763_v54 = vsel %vm3761_vm1, %v4307_v46, 0.0  ;;  %4501 = vmatprep.subr.bf16.mxu0 (!%p4257_p5), %v4952_v27  ;;  %v3800_v46 = vld [vmem:[%s5774_s5 + $0x38] sm:$0xff] (!%p4257_p5)  ;;  %v4508_v17 = vpack.c.bf16 (!%p4257_p5), %v3802_v53, %v3801_v52 }
 0x2be   : > { %v3764_v57 = vadd.f32 %v3763_v54, %v3762_v21  ;;  %v4505_v49 = vpack.c.bf16 (!%p4257_p5), %v3800_v46, %v3799_v45  ;;  %v3803_v21 = vld [vmem:[%s5774_s5 + $0x50] sm:$0xff] (!%p4257_p5)  ;;  %v3804_v54 = vld [vmem:[%s5774_s5 + $0x58] sm:$0xff] (!%p4257_p5) }
 0x2c0   : > { %4503 = vmatpush3.bf16.msra.mxu0 (!%p4257_p5), %v4502_v42 }
 0x2c1   : > { %4504 = vmatprep.subr.bf16.mxu0 (!%p4257_p5), %v4952_v27 }
 0x2c4   : > { %4506 = vmatpush3.bf16.msra.mxu0 (!%p4257_p5), %v4505_v49 }
 0x2c5   : > { %4507 = vmatprep.subr.bf16.mxu0 (!%p4257_p5), %v4952_v27 }
 0x2c8   : > { %4509 = vmatpush3.bf16.msra.mxu0 (!%p4257_p5), %v4508_v17 }
 0x2c9   : > { %4510 = vmatprep.subr.bf16.mxu0 (!%p4257_p5), %v4952_v27 }
 0x2d8   : > { %v4327_v55 = vpop.f32.mrb[4].mxu0 }
 0x2d9   : > { %v4349_v14 = vpop.f32.mrb[4].mxu1  ;;  %v4328_v26 = vpop.f32.mrb[5].mxu0 }
 0x2da   : > { %v4350_v59 = vpop.f32.mrb[5].mxu1  ;;  %v4329_v61 = vadd.f32 %v4328_v26, %v4327_v55  ;;  %v4330_v62 = vpop.f32.mrb[6].mxu0  ;;  %v3805_v55 = vld [vmem:[%s5774_s5 + $0x60] sm:$0xff] (!%p4257_p5) }
 0x2db   : > { %v4351_v60 = vadd.f32 %v4350_v59, %v4349_v14  ;;  %v4352_v63 = vpop.f32.mrb[6].mxu1  ;;  %v4331_v1 = vpop.f32.mrb[7].mxu0  ;;  %v3806_v14 = vld [vmem:[%s5774_s5 + $0x68] sm:$0xff] (!%p4257_p5)  ;;  %v3808_v62 = vld [vmem:[%s5774_s5 + $0x78] sm:$0xff] (!%p4257_p5) }
 0x2dc   : > { %v4353_v2 = vpop.f32.mrb[7].mxu1  ;;  %v3765_v23 = vsel %vm3761_vm1, %v4329_v61, 0.0  ;;  %v4514_v26 = vpack.c.bf16 (!%p4257_p5), %v3806_v14, %v3805_v55  ;;  %v4258_v61 = vld [vmem:[#allocation7] ss:$0 sm:$0xff] (!%p4257_p5) }
 0x2dd   : > { %v3767_v3 = vsel %vm3761_vm1, %v4351_v60, 0.0  ;;  %v3766_v4 = vadd.f32 %v3765_v23, %v3764_v57  ;;  %v4511_v57 = vpack.c.bf16 (!%p4257_p5), %v3804_v54, %v3803_v21  ;;  %v3807_v60 = vld [vmem:[%s5774_s5 + $0x70] sm:$0xff] (!%p4257_p5)  ;;  %v4259_v23 = vld [vmem:[#allocation9] ss:$0 sm:$0xff] (!%p4257_p5) }
 0x2de   : > { %v4517_v1 = vpack.c.bf16 (!%p4257_p5), %v3808_v62, %v3807_v60 }
 0x2df   : > { %v3768_v6 = vadd.f32 %v3767_v3, %v3766_v4  ;;  %4512 = vmatpush3.bf16.msra.mxu0 (!%p4257_p5), %v4511_v57 }
 0x2e0   : > { %4513 = vmatprep.subr.bf16.mxu0 (!%p4257_p5), %v4952_v27 }
 0x2e3   : > { %4515 = vmatpush3.bf16.msra.mxu0 (!%p4257_p5), %v4514_v26 }
 0x2e4   : > { %4516 = vmatprep.subr.bf16.mxu0 (!%p4257_p5), %v4952_v27 }
 0x2e7   : > { %4518 = vmatpush3.bf16.msra.mxu0 (!%p4257_p5), %v4517_v1 }
 0x2f8   : > { %v4371_v0 = vpop.f32.mrb[8].mxu0 }
 0x2f9   : > { %v4393_v7 = vpop.f32.mrb[8].mxu1  ;;  %v4372_v8 = vpop.f32.mrb[9].mxu0 }
 0x2fa   : > { %v4394_v35 = vpop.f32.mrb[9].mxu1  ;;  %v4373_v36 = vadd.f32 %v4372_v8, %v4371_v0  ;;  %v4374_v41 = vpop.f32.mrb[10].mxu0 }
 0x2fb   : > { %v4395_v40 = vadd.f32 %v4394_v35, %v4393_v7  ;;  %v4396_v9 = vpop.f32.mrb[10].mxu1  ;;  %v4375_v10 = vpop.f32.mrb[11].mxu0 }
 0x2fc   : > { %v4397_v11 = vpop.f32.mrb[11].mxu1  ;;  %v3769_v28 = vsel %vm3761_vm1, %v4373_v36, 0.0 }
 0x2fd   : > { %v3771_v32 = vsel %vm3761_vm1, %v4395_v40, 0.0  ;;  %v3770_v5 = vadd.f32 %v3769_v28, %v3768_v6 }
 0x2ff   : > { %v3772_v29 = vadd.f32 %v3771_v32, %v3770_v5 }
 0x318   : > { %v4415_v43 = vpop.f32.mrb[12].mxu0 }
 0x319   : > { %v4437_v50 = vpop.f32.mrb[12].mxu1  ;;  %v4416_v44 = vpop.f32.mrb[13].mxu0 }
 0x31a   : > { %v4417_v51 = vadd.f32 %v4416_v44, %v4415_v43  ;;  %v4438_v33 = vpop.f32.mrb[13].mxu1  ;;  %v4418_v13 = vpop.f32.mrb[14].mxu0 }
 0x31b   : > { %v4439_v16 = vadd.f32 %v4438_v33, %v4437_v50  ;;  %v4440_v15 = vpop.f32.mrb[14].mxu1  ;;  %v4419_v20 = vpop.f32.mrb[15].mxu0 }
 0x31c   : > { %v3773_v18 = vsel %vm3761_vm1, %v4417_v51, 0.0  ;;  %v4441_v47 = vpop.f32.mrb[15].mxu1 }
 0x31d   : > { %v3774_v48 = vadd.f32 %v3773_v18, %v3772_v29  ;;  %v3775_v56 = vsel %vm3761_vm1, %v4439_v16, 0.0  ;;  %3782 = sbr.rel (%p4257_p5) target bundleno = 1030 (0x406), region = 68 }
 0x31f   : > { %v3776_v12 = vadd.f32 %v3775_v56, %v3774_v48 }
 0x321   : > { %v3777_v19 = vadd.f32 %v3776_v12, %v3760_v58 }
 0x323   : > { %3778 = vst [vmem:[#allocation3] sm:$0x3] %v3777_v19 }
 0x32a   : > { %v3783_v59 = vld [vmem:[#allocation3] sm:$0x3] }
 0x32b   : > { %v3791_v63 = vadd.f32 %v4258_v61, %v3783_v59 }
 0x32d   : > { %v3792_v2 = vmax.f32 %v3791_v63, 0.0 }
 0x32f   : > { %4493 = vmatmul.mubr.f32.vlgmr.msra.gmra.mrb[0].mxu0 %v3792_v2 }
 0x402   : > { %v3882_v3 = vpop.f32.mrb[0].mxu0 }
 0x403   : > { %v3883_v4 = vadd.f32 %v4259_v23, %v3882_v3  ;;  %v4494_v6 = vpop.f32.mrb[1].mxu0 }
 0x405   : > { %3887 = vst.msk [vmem:[#allocation10] sm:$0x3] %vm3886_vm3, %v3883_v4 }
 0x406 PF: > { %s5792_s12 = sadd.s32 4294967295, %s4939_s29   ;;  %s4955_s8 = smov [#allocation10]  }
 0x407   : > { %p5725_p7 = scmp.eq.s32.totalorder %s5792_s12, 3  ;;  %s3897_s15 = sshll.u32 %s4955_s8, 4  ;;  %s3898_s15 = int_to_ptr.vmem [resolvable:$true] %s3897_s15 }
 0x408   : > { %s4855_s16 = scalar_lea.vmem %s3898_s15, 32  ;;  %p4862_p11 = scmp.lt.s32.totalorder %s3898_s15, %s3898_s15 }
 0x409   : > { %p4856_p9 = scmp.ne.s32.totalorder %s3898_s15, %s4855_s16  ;;  %p4863_p3 = scmp.lt.s32.totalorder %s4855_s16, %s4855_s16 }
 0x40b   : > { %p4857_p10 = pnand %p4856_p9, %p5725_p7  ;;  %p4864_p12 = por %p4863_p3, %p4862_p11 }
 0x40d   : > { %p4858_p0 = pneg %p4857_p10 }
 0x40f   : > { %p4865_p1 = pnand %p4864_p12, %p4858_p0 }
 0x411   : > { %4868 = shalt.err (!%p4865_p1)
}
 0x412   : > { %s4869_s9 = scalar_lea.hbm %s5776_s7, 32 }
 0x413   : > { %p4870_p2 = scmp.ne.s32.totalorder %s5776_s7, %s4869_s9  ;;  %p4875_p4 = scmp.lt.u32.totalorder %s4869_s9, %s5776_s7 }
 0x415   : > { %p4871_p8 = pnand %p4870_p2, %p5725_p7 }
 0x417   : > { %p4872_p13 = pneg %p4871_p8 }
 0x419   : > { %p4877_p6 = pnand %p4875_p4, %p4872_p13 }
 0x41b   : > { %4880 = shalt.err (!%p4877_p6)
}
 0x41c   : > { %4530 = dma.vmem_to_hbm [thread:$0]  (%p5725_p7), %s3898_s15, 32, %s5776_s7, [#allocation6]  }
 0x41d   : > { %4914 = dma.done.wait (%p5725_p7), [#allocation6], 32  }
 0x41e   : > { %4916 = vsyncadd (%p5725_p7), [#allocation6], 4294967264 }
 0x41f PF: > { %s22_s29 = sadd.s32 1, %s4939_s29   ;;  %s5794_s24 = smov %s4923_s25 }
 0x420   : > { %p19_p5 = scmp.ge.s32.totalorder %s22_s29, 6   ;;  %s5795_s25 = smov %s4927_s26 }
 0x421   : > { %s5796_s26 = smov %s5120_s18  ;;  %s5797_s27 = smov %s4935_s28 }
 0x422   : > { %s5798_s28 = smov %s5800_s20  ;;  %21 = sbr.rel (!%p19_p5) target bundleno = 6 (0x6), region = 109 }
 0x429   :  { %3910 = vsyncpa [#allocation5], 1 }
 0x42a   :  { %3912 = vsyncpa [#allocation5 + $0x1], 1 }
 0x42b   :  { %3913 = vsyncpa [#allocation8], 1 }
 0x42c   :  { %3914 = vsyncpa [#allocation6], 1 }
 0x42d   :  { %3916 = vsyncpa [#allocation6 + $0x1], 1 }

</bundles_post_ra>
